<compile_context>
chip_gen: v7x
topology: tpu7x:2x2x1
jax: 0.10.0
libtpu: 0.0.40
codegen_flags: <defaults>
</compile_context>

<pallas_src>
import jax
import jax.numpy as jnp
import numpy as np
from jax.experimental import pallas as pl
from jax.experimental.pallas import tpu as pltpu

PAD_TOKEN_ID = 1
CLS_TOKEN_ID = 0

LANE = 128     # hidden dim is padded to a multiple of the 128-lane axis
SUBLANE = 8


def _round_up(x, m):
    return ((x + m - 1) // m) * m


# ---------------------------------------------------------------------------
# Kernel 1: synthetic encoder hot path (per-token dense + sigmoid + mask)
# ---------------------------------------------------------------------------
def _encoder_kernel(x_ref, w_ref, b_ref, fmask_ref, rmask_ref, o_ref):
    # x_ref     : (TILE_M, Dp) bf16  token embeddings
    # w_ref     : (Dp, Dp)     bf16  dense weight   (resident across grid steps)
    # b_ref     : (1, Dp)      f32   bias            (resident)
    # fmask_ref : (1, Dp)      f32   1 for real features, 0 for lane padding
    # rmask_ref : (TILE_M, 1)  f32   1 for real (non-PAD) tokens
    # o_ref     : (TILE_M, Dp) f32   lane-dense output slab
    h = jnp.dot(x_ref[...], w_ref[...], preferred_element_type=jnp.float32)
    h = jax.nn.sigmoid(h + b_ref[...])
    o_ref[...] = h * rmask_ref[...] * fmask_ref[...]


def _encoder_vmem_limit(tile_m, d_pad):
    act_in = tile_m * d_pad * 2          # bf16 input block
    act_out = tile_m * d_pad * 4         # f32 output block
    rmask = tile_m * 4
    resident = d_pad * d_pad * 2 + 2 * d_pad * 4
    budget = 2 * (act_in + act_out + rmask) + 2 * resident + (2 << 20)
    # Stay well under v7x's 64 MiB per-TC VMEM.
    return int(min(max(budget, 4 << 20), 48 << 20))


def encoder_forward(token_ids, params):
    """Stand-in for RobertaModel(ids, attention_mask)[0], flattened per token.

    token_ids : (M,) int32  ->  (M, D_pad) float32 activations.
    """
    # TODO(synk): the pretrained RobertaModel has no in-script equivalent; it is
    # replaced by a deterministic embedding + dense + sigmoid per-token encoder
    # with the attention mask applied multiplicatively.
    emb_tab, w, b, fmask = params
    d_pad = w.shape[0]
    m = token_ids.shape[0]

    x = emb_tab[token_ids]                                            # (M, Dp) bf16
    rmask = (token_ids != PAD_TOKEN_ID).astype(jnp.float32)[:, None]  # (M, 1)

    tile_m = min(512, _round_up(m, SUBLANE))
    m_pad = _round_up(m, tile_m)
    if m_pad != m:
        x = jnp.pad(x, ((0, m_pad - m), (0, 0)))
        rmask = jnp.pad(rmask, ((0, m_pad - m), (0, 0)))

    out = pl.pallas_call(
        _encoder_kernel,
        out_shape=jax.ShapeDtypeStruct((m_pad, d_pad), jnp.float32),
        grid=(m_pad // tile_m,),
        in_specs=[
            pl.BlockSpec((tile_m, d_pad), lambda i: (i, 0)),
            pl.BlockSpec((d_pad, d_pad), lambda i: (0, 0)),   # resident weight
            pl.BlockSpec((1, d_pad), lambda i: (0, 0)),       # resident bias
            pl.BlockSpec((1, d_pad), lambda i: (0, 0)),       # resident feature mask
            pl.BlockSpec((tile_m, 1), lambda i: (i, 0)),
        ],
        out_specs=pl.BlockSpec((tile_m, d_pad), lambda i: (i, 0)),
        compiler_params=pltpu.CompilerParams(
            dimension_semantics=("parallel",),
            vmem_limit_bytes=_encoder_vmem_limit(tile_m, d_pad),
        ),
    )(x, w, b, fmask, rmask)
    return out[:m]


# ---------------------------------------------------------------------------
# Kernel 2: normalise + dot-product score (BalSum.get_score with F.normalize
#           of doc() / query() fused in)
# ---------------------------------------------------------------------------
def _score_kernel(q_ref, d_ref, o_ref):
    q = q_ref[...]                                       # (B, Np, Dp) f32
    d = d_ref[...]                                       # (B, Kp, Dp) f32
    # F.normalize(x, p=2, dim=-1, eps=1e-12) == x * rsqrt(max(||x||^2, 1e-24))
    qn = q * jax.lax.rsqrt(jnp.maximum(jnp.sum(q * q, axis=-1, keepdims=True), 1e-24))
    dn = d * jax.lax.rsqrt(jnp.maximum(jnp.sum(d * d, axis=-1, keepdims=True), 1e-24))
    score = jnp.einsum('bnd,bkd->bnk', qn, dn,
                       preferred_element_type=jnp.float32)           # (B, Np, Kp)
    denom = jnp.sum(score, axis=-1, keepdims=True)                   # (B, Np, 1)
    # Only the all-zero padded query rows hit denom == 0 exactly; real rows are
    # untouched (the PyTorch reference would NaN on a true zero denominator).
    denom = jnp.where(denom == 0.0, 1.0, denom)
    inv = pl.reciprocal(denom, approx=True)                          # EUP slot
    o_ref[...] = jnp.sum(score * score * inv, axis=-1)               # (B, Np)


def get_score(query_emb, doc_emb):
    """BalSum.get_score; L2 normalisation of both sides is fused in-kernel."""
    b, n, d_pad = query_emb.shape
    _, k, _ = doc_emb.shape
    n_pad = max(LANE, _round_up(n, SUBLANE))     # lane-dense output width
    k_pad = max(SUBLANE, _round_up(k, SUBLANE))
    q = query_emb
    if n_pad != n:
        q = jnp.pad(q, ((0, 0), (0, n_pad - n), (0, 0)))
    d = doc_emb
    if k_pad != k:
        d = jnp.pad(d, ((0, 0), (0, k_pad - k), (0, 0)))
    out = pl.pallas_call(
        _score_kernel,
        out_shape=jax.ShapeDtypeStruct((b, n_pad), jnp.float32),
        grid=(1,),
        in_specs=[
            pl.BlockSpec((b, n_pad, d_pad), lambda i: (0, 0, 0)),
            pl.BlockSpec((b, k_pad, d_pad), lambda i: (0, 0, 0)),
        ],
        out_specs=pl.BlockSpec((b, n_pad), lambda i: (0, 0)),
    )(q, d)
    return out[:, :n]


# ---------------------------------------------------------------------------
# Glue mirroring BalSum.doc / BalSum.query / BalSum.forward (all on-device)
# ---------------------------------------------------------------------------
def gather_cls(enc_doc, text_id, k_max):
    """On-device CLS gather with a static K bound (replaces the host
    .nonzero()/.item() loop). Extra slots are zero rows, which are
    score-neutral exactly like the reference's zero padding."""
    _, s = text_id.shape
    cls_mask = text_id == CLS_TOKEN_ID
    pos = jnp.where(cls_mask, jnp.arange(s, dtype=jnp.int32)[None, :], s)
    pos = jnp.sort(pos, axis=-1)[:, :k_max]                  # first k_max CLS positions
    valid = pos < s
    doc = jnp.take_along_axis(enc_doc, jnp.minimum(pos, s - 1)[:, :, None], axis=1)
    doc = doc * valid[:, :, None].astype(doc.dtype)
    return doc, cls_mask.sum(-1)


def prepare_encoder_params(embed_table, w_enc, b_enc):
    """Pad hidden dim to a lane multiple, cast MXU operands to bf16."""
    vocab, d = embed_table.shape
    d_pad = max(LANE, _round_up(d, LANE))
    emb_tab = jnp.zeros((vocab, d_pad), jnp.bfloat16).at[:, :d].set(
        embed_table.astype(jnp.bfloat16))
    w = jnp.zeros((d_pad, d_pad), jnp.bfloat16).at[:d, :d].set(
        w_enc.astype(jnp.bfloat16))
    b = jnp.zeros((1, d_pad), jnp.float32).at[:, :d].set(
        jnp.reshape(b_enc, (1, d)).astype(jnp.float32))
    fmask = (jnp.arange(d_pad) < d).astype(jnp.float32)[None, :]
    return emb_tab, w, b, fmask


def balsum_forward(text_id, candidate_id=None, neg_id=None, params=None,
                   is_test=False, k_max=None):
    emb_tab, w, b, fmask = params
    d_pad = w.shape[0]
    bsz, s = text_id.shape
    _, c, sc = candidate_id.shape

    # Single encoder launch covering document + candidate (+ negative) tokens.
    tok = [text_id.reshape(-1), candidate_id.reshape(-1)]
    if not is_test:
        _, nneg, sn = neg_id.shape
        tok.append(neg_id.reshape(-1))
    tokens = jnp.concatenate(tok).astype(jnp.int32)
    enc = encoder_forward(tokens, params)                           # (M, Dp)

    ofs = 0
    enc_doc = enc[ofs:ofs + bsz * s].reshape(bsz, s, d_pad)
    ofs += bsz * s
    cand_emb = enc[ofs:ofs + bsz * c * sc].reshape(bsz, c, sc, d_pad)[:, :, 0, :]
    ofs += bsz * c * sc

    if k_max is None:
        k_max = _round_up(s, SUBLANE)        # static upper bound on #CLS per doc
    doc_emb, _cls_size = gather_cls(enc_doc, text_id, k_max)

    if not is_test:
        neg_emb = enc[ofs:ofs + bsz * nneg * sn].reshape(
            bsz, nneg, sn, d_pad)[:, :, 0, :]
        # One lane-dense score launch for candidates and negatives together.
        q_all = jnp.concatenate([cand_emb, neg_emb], axis=1)
        s_all = get_score(q_all, doc_emb)
        return {'score': s_all[:, :c], 'neg_score': s_all[:, c:c + nneg]}
    return {'score': get_score(cand_emb, doc_emb)}


# ---------------------------------------------------------------------------
if __name__ == "__main__":
    key = jax.random.PRNGKey(0)
    k_emb, k_w, k_b, k_txt, k_cand, k_neg = jax.random.split(key, 6)

    VOCAB, D = 50, 32        # hidden_size = 32 (padded to 128 lanes internally)
    B, S = 2, 16             # batch, doc seq len
    C, N, SC = 4, 3, 8       # candidate count, negative count, summary seq len

    # Deterministic synthetic "encoder" parameters.
    embed_table = jax.random.normal(k_emb, (VOCAB, D), jnp.float32) * 0.02
    w_enc = jax.random.normal(k_w, (D, D), jnp.float32) * 0.05
    b_enc = jax.random.normal(k_b, (1, D), jnp.float32) * 0.01
    params = prepare_encoder_params(embed_table, w_enc, b_enc)

    # np.array(...) makes writable host copies (np.asarray on a jax array is read-only).
    text_id = np.array(jax.random.randint(k_txt, (B, S), 2, VOCAB), dtype=np.int32)
    text_id[0, [0, 5, 10]] = CLS_TOKEN_ID
    text_id[0, 13:] = PAD_TOKEN_ID
    text_id[1, [0, 8]] = CLS_TOKEN_ID
    text_id[1, 12:] = PAD_TOKEN_ID
    text_id = jnp.asarray(text_id)

    cand_id = np.array(jax.random.randint(k_cand, (B, C, SC), 2, VOCAB), dtype=np.int32)
    cand_id[:, :, 0] = CLS_TOKEN_ID
    cand_id[:, :, -1] = PAD_TOKEN_ID
    cand_id = jnp.asarray(cand_id)

    neg_id = np.array(jax.random.randint(k_neg, (B, N, SC), 2, VOCAB), dtype=np.int32)
    neg_id[:, :, 0] = CLS_TOKEN_ID
    neg_id[:, :, -1] = PAD_TOKEN_ID
    neg_id = jnp.asarray(neg_id)

    fwd = jax.jit(balsum_forward, static_argnames=("is_test", "k_max"))
    out = fwd(text_id, cand_id, neg_id, params=params, is_test=False, k_max=8)
    out = jax.block_until_ready(out)

    assert out['score'].shape == (B, C)
    assert out['neg_score'].shape == (B, N)
    assert bool(jnp.all(jnp.isfinite(out['score'])))
    assert bool(jnp.all(jnp.isfinite(out['neg_score'])))
    print("KERNEL_OK")
</pallas_src>

<mosaic_0001>
module attributes {stable_mosaic.version = 11 : i64} {
  func.func @_encoder_kernel(%arg0: i32, %arg1: memref<144x128xbf16, #tpu.memory_space<vmem>>, %arg2: memref<128x128xbf16, #tpu.memory_space<vmem>>, %arg3: memref<1x128xf32, #tpu.memory_space<vmem>>, %arg4: memref<1x128xf32, #tpu.memory_space<vmem>>, %arg5: memref<144x1xf32, #tpu.memory_space<vmem>>, %arg6: memref<144x128xf32, #tpu.memory_space<vmem>>) attributes {dimension_semantics = [#tpu.dimension_semantics<parallel>], iteration_bounds = array<i64: 1>, scalar_prefetch = 0 : i64, scratch_operands = 0 : i64, tpu.core_type = #tpu.core_type<tc>, window_params = [{transform_indices = @transform_0, window_bounds = array<i64: 144, 128>}, {pipeline_mode = #tpu.pipeline_mode<synchronous>, transform_indices = @transform_1, window_bounds = array<i64: 128, 128>}, {pipeline_mode = #tpu.pipeline_mode<synchronous>, transform_indices = @transform_2, window_bounds = array<i64: 1, 128>}, {pipeline_mode = #tpu.pipeline_mode<synchronous>, transform_indices = @transform_3, window_bounds = array<i64: 1, 128>}, {transform_indices = @transform_4, window_bounds = array<i64: 144, 1>}, {transform_indices = @transform_5, window_bounds = array<i64: 144, 128>}]} {
    %c0 = arith.constant 0 : index
    %c0_0 = arith.constant 0 : index
    %0 = vector.load %arg1[%c0, %c0_0] : memref<144x128xbf16, #tpu.memory_space<vmem>>, vector<144x128xbf16>
    %c0_1 = arith.constant 0 : index
    %c0_2 = arith.constant 0 : index
    %1 = vector.load %arg2[%c0_1, %c0_2] : memref<128x128xbf16, #tpu.memory_space<vmem>>, vector<128x128xbf16>
    %cst = arith.constant dense<0.000000e+00> : vector<144x128xf32>
    %2 = tpu.matmul %0, %1, %cst {dimension_numbers = #tpu.dot_dimension_numbers<[1], [0], [0], [1], [0, 0, 1, 1], [], []>} : vector<144x128xbf16>, vector<128x128xbf16>, vector<144x128xf32> -> vector<144x128xf32>
    %c0_3 = arith.constant 0 : index
    %c0_4 = arith.constant 0 : index
    %3 = vector.load %arg3[%c0_3, %c0_4] : memref<1x128xf32, #tpu.memory_space<vmem>>, vector<1x128xf32>
    %4 = vector.broadcast %3 : vector<1x128xf32> to vector<144x128xf32>
    %5 = arith.addf %2, %4 : vector<144x128xf32>
    %6 = arith.negf %5 : vector<144x128xf32>
    %7 = math.exp %6 : vector<144x128xf32>
    %cst_5 = arith.constant 1.000000e+00 : f32
    %8 = vector.broadcast %cst_5 : f32 to vector<144x128xf32>
    %9 = arith.addf %8, %7 : vector<144x128xf32>
    %10 = arith.divf %8, %9 : vector<144x128xf32>
    %c0_6 = arith.constant 0 : index
    %c0_7 = arith.constant 0 : index
    %11 = vector.load %arg5[%c0_6, %c0_7] : memref<144x1xf32, #tpu.memory_space<vmem>>, vector<144x1xf32>
    %12 = vector.broadcast %11 : vector<144x1xf32> to vector<144x128xf32>
    %13 = arith.mulf %10, %12 : vector<144x128xf32>
    %c0_8 = arith.constant 0 : index
    %c0_9 = arith.constant 0 : index
    %14 = vector.load %arg4[%c0_8, %c0_9] : memref<1x128xf32, #tpu.memory_space<vmem>>, vector<1x128xf32>
    %15 = vector.broadcast %14 : vector<1x128xf32> to vector<144x128xf32>
    %16 = arith.mulf %13, %15 : vector<144x128xf32>
    %c0_10 = arith.constant 0 : index
    %c0_11 = arith.constant 0 : index
    %17 = vector.load %arg6[%c0_10, %c0_11] : memref<144x128xf32, #tpu.memory_space<vmem>>, vector<144x128xf32>
    tpu.vector_store %arg6[%c0_10, %c0_11], %16 {strides = array<i32>} : memref<144x128xf32, #tpu.memory_space<vmem>>, vector<144x128xf32>,
    return
  }
  func.func @transform_0(%arg0: i32) -> (i32, i32) {
    %c0_i32 = arith.constant 0 : i32
    %c0_i32_0 = arith.constant 0 : i32
    return %arg0, %c0_i32 : i32, i32
  }
  func.func @transform_1(%arg0: i32) -> (i32, i32) {
    %c0_i32 = arith.constant 0 : i32
    %c0_i32_0 = arith.constant 0 : i32
    %c0_i32_1 = arith.constant 0 : i32
    return %c0_i32, %c0_i32_0 : i32, i32
  }
  func.func @transform_2(%arg0: i32) -> (i32, i32) {
    %c0_i32 = arith.constant 0 : i32
    %c0_i32_0 = arith.constant 0 : i32
    %c0_i32_1 = arith.constant 0 : i32
    return %c0_i32, %c0_i32_0 : i32, i32
  }
  func.func @transform_3(%arg0: i32) -> (i32, i32) {
    %c0_i32 = arith.constant 0 : i32
    %c0_i32_0 = arith.constant 0 : i32
    %c0_i32_1 = arith.constant 0 : i32
    return %c0_i32, %c0_i32_0 : i32, i32
  }
  func.func @transform_4(%arg0: i32) -> (i32, i32) {
    %c0_i32 = arith.constant 0 : i32
    %c0_i32_0 = arith.constant 0 : i32
    return %arg0, %c0_i32 : i32, i32
  }
  func.func @transform_5(%arg0: i32) -> (i32, i32) {
    %c0_i32 = arith.constant 0 : i32
    %c0_i32_0 = arith.constant 0 : i32
    return %arg0, %c0_i32 : i32, i32
  }
}

module attributes {stable_mosaic.version = 11 : i64} {
  func.func @_score_kernel(%arg0: i32, %arg1: memref<2x128x128xf32, #tpu.memory_space<vmem>>, %arg2: memref<2x8x128xf32, #tpu.memory_space<vmem>>, %arg3: memref<2x128xf32, #tpu.memory_space<vmem>>) attributes {dimension_semantics = [#tpu.dimension_semantics<arbitrary>], iteration_bounds = array<i64: 1>, scalar_prefetch = 0 : i64, scratch_operands = 0 : i64, tpu.core_type = #tpu.core_type<tc>, window_params = [{pipeline_mode = #tpu.pipeline_mode<synchronous>, transform_indices = @transform_0, window_bounds = array<i64: 2, 128, 128>}, {pipeline_mode = #tpu.pipeline_mode<synchronous>, transform_indices = @transform_1, window_bounds = array<i64: 2, 8, 128>}, {pipeline_mode = #tpu.pipeline_mode<synchronous>, transform_indices = @transform_2, window_bounds = array<i64: 2, 128>}]} {
    %c0 = arith.constant 0 : index
    %c0_0 = arith.constant 0 : index
    %c0_1 = arith.constant 0 : index
    %0 = vector.load %arg1[%c0, %c0_0, %c0_1] : memref<2x128x128xf32, #tpu.memory_space<vmem>>, vector<2x128x128xf32>
    %c0_2 = arith.constant 0 : index
    %c0_3 = arith.constant 0 : index
    %c0_4 = arith.constant 0 : index
    %1 = vector.load %arg2[%c0_2, %c0_3, %c0_4] : memref<2x8x128xf32, #tpu.memory_space<vmem>>, vector<2x8x128xf32>
    %2 = arith.mulf %0, %0 : vector<2x128x128xf32>
    %cst = arith.constant dense<0.000000e+00> : vector<2x128xf32>
    %3 = vector.multi_reduction <add>, %2, %cst [2] : vector<2x128x128xf32> to vector<2x128xf32>
    %4 = vector.shape_cast %3 : vector<2x128xf32> to vector<2x128x1xf32>
    %cst_5 = arith.constant 1.000000e-24 : f32
    %5 = vector.broadcast %cst_5 : f32 to vector<2x128x1xf32>
    %6 = arith.maximumf %4, %5 : vector<2x128x1xf32>
    %7 = math.rsqrt %6 : vector<2x128x1xf32>
    %8 = vector.broadcast %7 : vector<2x128x1xf32> to vector<2x128x128xf32>
    %9 = arith.mulf %0, %8 : vector<2x128x128xf32>
    %10 = arith.mulf %1, %1 : vector<2x8x128xf32>
    %cst_6 = arith.constant dense<0.000000e+00> : vector<2x8xf32>
    %11 = vector.multi_reduction <add>, %10, %cst_6 [2] : vector<2x8x128xf32> to vector<2x8xf32>
    %12 = vector.shape_cast %11 : vector<2x8xf32> to vector<2x8x1xf32>
    %cst_7 = arith.constant 1.000000e-24 : f32
    %13 = vector.broadcast %cst_7 : f32 to vector<2x8x1xf32>
    %14 = arith.maximumf %12, %13 : vector<2x8x1xf32>
    %15 = math.rsqrt %14 : vector<2x8x1xf32>
    %16 = vector.broadcast %15 : vector<2x8x1xf32> to vector<2x8x128xf32>
    %17 = arith.mulf %1, %16 : vector<2x8x128xf32>
    "tpu.trace_start"() <{level = 10 : i32, message = "bnd,bkd->bnk"}> : () -> ()
    %cst_8 = arith.constant dense<0.000000e+00> : vector<2x128x8xf32>
    %18 = tpu.matmul %9, %17, %cst_8 {dimension_numbers = #tpu.dot_dimension_numbers<[2], [2], [1], [1], [0, 0, 0, 1, 1, 1], [0], [0]>} : vector<2x128x128xf32>, vector<2x8x128xf32>, vector<2x128x8xf32> -> vector<2x128x8xf32>
    "tpu.trace_stop"() : () -> ()
    %cst_9 = arith.constant dense<0.000000e+00> : vector<2x128xf32>
    %19 = vector.multi_reduction <add>, %18, %cst_9 [2] : vector<2x128x8xf32> to vector<2x128xf32>
    %20 = vector.shape_cast %19 : vector<2x128xf32> to vector<2x128x1xf32>
    %cst_10 = arith.constant 0.000000e+00 : f32
    %21 = vector.broadcast %cst_10 : f32 to vector<2x128x1xf32>
    %22 = arith.cmpf oeq, %20, %21 : vector<2x128x1xf32>
    %cst_11 = arith.constant 1.000000e+00 : f32
    %23 = vector.broadcast %cst_11 : f32 to vector<2x128x1xf32>
    %24 = arith.select %22, %23, %20 : vector<2x128x1xi1>, vector<2x128x1xf32>
    %25 = tpu.reciprocal %24 {approx = true} : vector<2x128x1xf32> -> vector<2x128x1xf32>
    %26 = arith.mulf %18, %18 : vector<2x128x8xf32>
    %27 = vector.broadcast %25 : vector<2x128x1xf32> to vector<2x128x8xf32>
    %28 = arith.mulf %26, %27 : vector<2x128x8xf32>
    %cst_12 = arith.constant dense<0.000000e+00> : vector<2x128xf32>
    %29 = vector.multi_reduction <add>, %28, %cst_12 [2] : vector<2x128x8xf32> to vector<2x128xf32>
    %c0_13 = arith.constant 0 : index
    %c0_14 = arith.constant 0 : index
    %30 = vector.load %arg3[%c0_13, %c0_14] : memref<2x128xf32, #tpu.memory_space<vmem>>, vector<2x128xf32>
    tpu.vector_store %arg3[%c0_13, %c0_14], %29 {strides = array<i32>} : memref<2x128xf32, #tpu.memory_space<vmem>>, vector<2x128xf32>,
    return
  }
  func.func @transform_0(%arg0: i32) -> (i32, i32, i32) {
    %c0_i32 = arith.constant 0 : i32
    %c0_i32_0 = arith.constant 0 : i32
    %c0_i32_1 = arith.constant 0 : i32
    %c0_i32_2 = arith.constant 0 : i32
    return %c0_i32, %c0_i32_0, %c0_i32_1 : i32, i32, i32
  }
  func.func @transform_1(%arg0: i32) -> (i32, i32, i32) {
    %c0_i32 = arith.constant 0 : i32
    %c0_i32_0 = arith.constant 0 : i32
    %c0_i32_1 = arith.constant 0 : i32
    %c0_i32_2 = arith.constant 0 : i32
    return %c0_i32, %c0_i32_0, %c0_i32_1 : i32, i32, i32
  }
  func.func @transform_2(%arg0: i32) -> (i32, i32) {
    %c0_i32 = arith.constant 0 : i32
    %c0_i32_0 = arith.constant 0 : i32
    %c0_i32_1 = arith.constant 0 : i32
    return %c0_i32, %c0_i32_0 : i32, i32
  }
}

</mosaic_0001>

<bundles_post_ra>
// kernel: balsum_forward.2
= control target key start
LH: loop header
LB: loop body
LE: loop exit
PB: predicated region body
PF: predicated region fallthrough
CT: control target
= control target key end

     0   :  { %v766_v0 = vmov 0.0   ;;  %vm767_vm0 = vmmov 0   ;;  %v768_v3 = vmov 0   ;;  %s1068_s1 = inlined_call_operand.vmem [shape: bf16[128,128], index: 1, kind: input, shape index: {}]   ;;  %s1069_s0 = inlined_call_operand.vmem [shape: bf16[144,128], index: 0, kind: input, shape index: {}]   ;;  %s1070_s4 = inlined_call_operand.vmem [shape: f32[144,1], index: 4, kind: input, shape index: {}]   ;;  %s1071_s2 = inlined_call_operand.vmem [shape: f32[1,128], index: 2, kind: input, shape index: {}]   ;;  %s1072_s3 = inlined_call_operand.vmem [shape: f32[1,128], index: 3, kind: input, shape index: {}]   ;;  %s1073_s5 = inlined_call_operand.vmem [shape: f32[144,128], index: 5, kind: output, shape index: {}]  }
   0x1   :  { %604 = vmatprep.subr.bf16.mxu0 %v766_v0  ;;  %656 = vmatprep.subr.bf16.mxu1 %v766_v0  ;;  %v677_v1 = vld [vmem:[%s1068_s1] sm:$0xff]   ;;  %v678_v2 = vld [vmem:[%s1068_s1 + $0x8] sm:$0xff]   ;;  %v679_v4 = vld [vmem:[%s1068_s1 + $0x10] sm:$0xff]  }
   0x2   :  { %620 = vmatprep.mubr.msk.bf16.mxu0 %vm767_vm0, %v766_v0  ;;  %640 = vmatprep.mubr.msk.bf16.mxu1 %vm767_vm0, %v766_v0  ;;  %v680_v5 = vld [vmem:[%s1068_s1 + $0x18] sm:$0xff]   ;;  %v681_v6 = vld [vmem:[%s1068_s1 + $0x20] sm:$0xff]   ;;  %v379_v7 = vld [vmem:[%s1070_s4 + $0x10] sm:$0xff] }
   0x3   :  { %605 = vmatpush3.bf16.msra.mxu0 %v677_v1  ;;  %664 = vmatpush3.bf16.msra.mxu1 %v677_v1  ;;  %v377_v8 = vld [vmem:[%s1070_s4] sm:$0xff]  ;;  %v682_v9 = vld [vmem:[%s1068_s1 + $0x28] sm:$0xff]   ;;  %v380_v10 = vld [vmem:[%s1070_s4 + $0x18] sm:$0xff] }
   0x4   :  { %606 = vmatprep.subr.bf16.mxu0 %v766_v0  ;;  %657 = vmatprep.subr.bf16.mxu1 %v766_v0  ;;  %v378_v11 = vld [vmem:[%s1070_s4 + $0x8] sm:$0xff]  ;;  %v683_v12 = vld [vmem:[%s1068_s1 + $0x30] sm:$0xff]   ;;  %v381_v14 = vld [vmem:[%s1070_s4 + $0x20] sm:$0xff] }
   0x5   :  { %676 = vset.pattern.permute.xlu1 %v768_v3  ;;  %675 = vset.pattern.permute.xlu0 %v768_v3  ;;  %v382_v13 = vld [vmem:[%s1070_s4 + $0x28] sm:$0xff]  ;;  %v684_v15 = vld [vmem:[%s1068_s1 + $0x38] sm:$0xff]   ;;  %v685_v16 = vld [vmem:[%s1069_s0] sm:$0xff]  }
   0x6   :  { %407 = vperm.xlu1 %676, %v379_v7   ;;  %397 = vperm.xlu0 %675, %v377_v8   ;;  %v686_v17 = vld [vmem:[%s1069_s0 + $0x28] sm:$0xff]   ;;  %v384_v18 = vld [vmem:[%s1070_s4 + $0x38] sm:$0xff]  ;;  %v383_v19 = vld [vmem:[%s1070_s4 + $0x30] sm:$0xff] }
   0x7   :  { %607 = vmatpush3.bf16.msra.mxu0 %v678_v2  ;;  %665 = vmatpush3.bf16.msra.mxu1 %v678_v2  ;;  %v386_v20 = vld [vmem:[%s1070_s4 + $0x48] sm:$0xff]  ;;  %v385_v21 = vld [vmem:[%s1070_s4 + $0x40] sm:$0xff]  ;;  %v688_v23 = vld [vmem:[%s1069_s0 + $0x30] sm:$0xff]  }
   0x8   :  { %608 = vmatprep.subr.bf16.mxu0 %v766_v0  ;;  %658 = vmatprep.subr.bf16.mxu1 %v766_v0  ;;  %v687_v22 = vld [vmem:[%s1069_s0 + $0x8] sm:$0xff]   ;;  %v388_v24 = vld [vmem:[%s1070_s4 + $0x58] sm:$0xff]  ;;  %v387_v25 = vld [vmem:[%s1070_s4 + $0x50] sm:$0xff] }
   0x9   :  { %v390_v26 = vld [vmem:[%s1070_s4 + $0x68] sm:$0xff]  ;;  %v389_v27 = vld [vmem:[%s1070_s4 + $0x60] sm:$0xff]  ;;  %v689_v28 = vld [vmem:[%s1069_s0 + $0x10] sm:$0xff]  }
   0xa   :  { %412 = vperm.xlu1 %676, %v380_v10   ;;  %402 = vperm.xlu0 %675, %v378_v11   ;;  %v690_v29 = vld [vmem:[%s1069_s0 + $0x38] sm:$0xff]   ;;  %v391_v31 = vld [vmem:[%s1070_s4 + $0x70] sm:$0xff]  ;;  %v394_v32 = vld [vmem:[%s1070_s4 + $0x88] sm:$0xff] }
   0xb   :  { %609 = vmatpush3.bf16.msra.mxu0 %v679_v4  ;;  %666 = vmatpush3.bf16.msra.mxu1 %v679_v4  ;;  %v392_v30 = vld [vmem:[%s1070_s4 + $0x78] sm:$0xff]  ;;  %v393_v33 = vld [vmem:[%s1070_s4 + $0x80] sm:$0xff] }
   0xc   :  { %610 = vmatprep.subr.bf16.mxu0 %v766_v0  ;;  %659 = vmatprep.subr.bf16.mxu1 %v766_v0  ;;  %v691_v34 = vld [vmem:[%s1069_s0 + $0x18] sm:$0xff]   ;;  %v692_v35 = vld [vmem:[%s1069_s0 + $0x40] sm:$0xff]  }
   0xd   :  { %v693_v36 = vld [vmem:[%s1069_s0 + $0x20] sm:$0xff]  }
   0xe   :  { %422 = vperm.xlu1 %676, %v382_v13   ;;  %417 = vperm.xlu0 %675, %v381_v14   ;;  %v945_v39 = vld [vmem:[%s1071_s2] ss:$0 sm:$0xff] }
   0xf   :  { %611 = vmatpush3.bf16.msra.mxu0 %v680_v5  ;;  %667 = vmatpush3.bf16.msra.mxu1 %v680_v5 }
  0x10   :  { %612 = vmatprep.subr.bf16.mxu0 %v766_v0  ;;  %660 = vmatprep.subr.bf16.mxu1 %v766_v0 }
  0x12   :  { %432 = vperm.xlu1 %676, %v384_v18   ;;  %427 = vperm.xlu0 %675, %v383_v19  }
  0x13   :  { %613 = vmatpush3.bf16.msra.mxu0 %v681_v6  ;;  %668 = vmatpush3.bf16.msra.mxu1 %v681_v6 }
  0x14   :  { %614 = vmatprep.subr.bf16.mxu0 %v766_v0  ;;  %661 = vmatprep.subr.bf16.mxu1 %v766_v0 }
  0x16   :  { %442 = vperm.xlu1 %676, %v386_v20   ;;  %437 = vperm.xlu0 %675, %v385_v21  }
  0x17   :  { %615 = vmatpush3.bf16.msra.mxu0 %v682_v9  ;;  %669 = vmatpush3.bf16.msra.mxu1 %v682_v9 }
  0x18   :  { %616 = vmatprep.subr.bf16.mxu0 %v766_v0  ;;  %662 = vmatprep.subr.bf16.mxu1 %v766_v0 }
  0x1a   :  { %452 = vperm.xlu1 %676, %v388_v24   ;;  %447 = vperm.xlu0 %675, %v387_v25  }
  0x1b   :  { %617 = vmatpush3.bf16.msra.mxu0 %v683_v12  ;;  %670 = vmatpush3.bf16.msra.mxu1 %v683_v12 }
  0x1c   :  { %618 = vmatprep.subr.bf16.mxu0 %v766_v0  ;;  %663 = vmatprep.subr.bf16.mxu1 %v766_v0 }
  0x1e   :  { %462 = vperm.xlu1 %676, %v390_v26   ;;  %457 = vperm.xlu0 %675, %v389_v27  }
  0x1f   :  { %619 = vmatpush3.bf16.msra.mxu0 %v684_v15  ;;  %671 = vmatpush3.bf16.msra.mxu1 %v684_v15 }
  0x22   :  { %621 = vmatmul.mubr.bf16.vlgmr.msra.gmra.mrb[0].mxu0 %v685_v16  ;;  %641 = vmatmul.mubr.bf16.vlgmr.msra.gmra.mrb[0].mxu1 %v686_v17 }
  0x23   :  { %624 = vmatprep.mubr.msk.bf16.mxu0 %vm767_vm0, %v766_v0  ;;  %644 = vmatprep.mubr.msk.bf16.mxu1 %vm767_vm0, %v766_v0 }
  0x24   :  { %472 = vperm.xlu1 %676, %v392_v30   ;;  %467 = vperm.xlu0 %675, %v391_v31  }
  0x28   :  { %482 = vperm.xlu1 %676, %v394_v32   ;;  %477 = vperm.xlu0 %675, %v393_v33  }
  0x2a   :  { %625 = vmatmul.mubr.bf16.gmra.mrb[4].mxu0 %v687_v22  ;;  %645 = vmatmul.mubr.bf16.gmra.mrb[4].mxu1 %v688_v23 }
  0x2b   :  { %628 = vmatprep.mubr.msk.bf16.mxu0 %vm767_vm0, %v766_v0  ;;  %648 = vmatprep.mubr.msk.bf16.mxu1 %vm767_vm0, %v766_v0 }
  0x32   :  { %629 = vmatmul.mubr.bf16.gmra.mrb[8].mxu0 %v689_v28  ;;  %649 = vmatmul.mubr.bf16.gmra.mrb[8].mxu1 %v690_v29 }
  0x33   :  { %632 = vmatprep.mubr.msk.bf16.mxu0 %vm767_vm0, %v766_v0  ;;  %652 = vmatprep.mubr.msk.bf16.mxu1 %vm767_vm0, %v766_v0 }
  0x3a   :  { %633 = vmatmul.mubr.bf16.gmra.mrb[12].mxu0 %v691_v34  ;;  %653 = vmatmul.mubr.bf16.gmra.mrb[12].mxu1 %v692_v35 }
  0x3b   :  { %636 = vmatprep.mubr.msk.bf16.mxu0 %vm767_vm0, %v766_v0 }
  0x42   :  { %637 = vmatmul.mubr.bf16.gmra.mrb[16].mxu0 %v693_v36 }
  0x85   :  { %v938_v37 = vpop.permute.xlu1 %407  ;;  %v940_v38 = vpop.permute.xlu0 %397 }
  0x89   :  { %v947_v40 = vpop.permute.xlu1 %412  ;;  %v949_v41 = vpop.permute.xlu0 %402 }
  0x8d   :  { %v955_v58 = vpop.permute.xlu1 %422  ;;  %v957_v59 = vpop.permute.xlu0 %417 }
  0x91   :  { %v963_v13 = vpop.permute.xlu1 %432  ;;  %v965_v14 = vpop.permute.xlu0 %427 }
  0xf5   :  { %v198_v42 = vpop.f32.mrb[0].mxu0  ;;  %v238_v43 = vpop.f32.mrb[0].mxu1 }
  0xf6   :  { %v199_v44 = vadd.f32 %v945_v39, %v198_v42  ;;  %v239_v45 = vadd.f32 %v945_v39, %v238_v43  ;;  %v622_v46 = vpop.f32.mrb[1].mxu0  ;;  %v642_v47 = vpop.f32.mrb[1].mxu1 }
  0xf7   :  { %v201_v48 = vpop.f32.mrb[2].mxu0  ;;  %v241_v49 = vpop.f32.mrb[2].mxu1 }
  0xf8   :  { %v568_v50 = vmul.f32 -1.442695, %v199_v44  ;;  %v578_v51 = vmul.f32 -1.442695, %v239_v45  ;;  %v202_v52 = vadd.f32 %v945_v39, %v201_v48  ;;  %v242_v53 = vadd.f32 %v945_v39, %v241_v49  ;;  %v623_v54 = vpop.f32.mrb[3].mxu0  ;;  %v643_v55 = vpop.f32.mrb[3].mxu1 }
  0xf9   :  { %v971_v44 = vpop.permute.xlu1 %442  ;;  %v973_v45 = vpop.permute.xlu0 %437 }
  0xfa   :  { %694 = vpow2.f32 %v568_v50  ;;  %v569_v56 = vmul.f32 -1.442695, %v202_v52  ;;  %v579_v57 = vmul.f32 -1.442695, %v242_v53 }
  0xfb   :  { %696 = vpow2.f32 %v578_v51 }
  0xfc   :  { %698 = vpow2.f32 %v569_v56 }
  0xfd   :  { %700 = vpow2.f32 %v579_v57  ;;  %v206_v60 = vpop.f32.mrb[4].mxu0  ;;  %v246_v61 = vpop.f32.mrb[4].mxu1 }
  0xfe   :  { %v207_v62 = vadd.f32 %v945_v39, %v206_v60  ;;  %v247_v63 = vadd.f32 %v945_v39, %v246_v61  ;;  %v626_v0 = vpop.f32.mrb[5].mxu0  ;;  %v646_v1 = vpop.f32.mrb[5].mxu1 }
  0xff   :  { %v209_v2 = vpop.f32.mrb[6].mxu0  ;;  %v249_v3 = vpop.f32.mrb[6].mxu1 }
 0x100   :  { %v570_v4 = vmul.f32 -1.442695, %v207_v62  ;;  %v580_v5 = vmul.f32 -1.442695, %v247_v63  ;;  %v210_v6 = vadd.f32 %v945_v39, %v209_v2  ;;  %v250_v7 = vadd.f32 %v945_v39, %v249_v3  ;;  %v627_v8 = vpop.f32.mrb[7].mxu0  ;;  %v647_v9 = vpop.f32.mrb[7].mxu1 }
 0x101   :  { %v980_v3 = vld [vmem:[%s1072_s3] ss:$0 sm:$0xff]  ;;  %v448_v9 = vpop.permute.xlu0 %447 }
 0x102   :  { %702 = vpow2.f32 %v570_v4  ;;  %v571_v10 = vmul.f32 -1.442695, %v210_v6  ;;  %v581_v11 = vmul.f32 -1.442695, %v250_v7 }
 0x103   :  { %704 = vpow2.f32 %v580_v5 }
 0x104   :  { %v695_v12 = vpop.eup %694  ;;  %706 = vpow2.f32 %v571_v10 }
 0x105   :  { %v697_v15 = vpop.eup %696  ;;  %v323_v16 = vadd.f32 1.0, %v695_v12  ;;  %708 = vpow2.f32 %v581_v11  ;;  %v214_v17 = vpop.f32.mrb[8].mxu0 }
 0x106   :  { %v254_v18 = vpop.f32.mrb[8].mxu1  ;;  %v699_v19 = vpop.eup %698  ;;  %v333_v20 = vadd.f32 1.0, %v697_v15  ;;  %v215_v21 = vadd.f32 %v945_v39, %v214_v17 }
 0x107   :  { %v255_v22 = vadd.f32 %v945_v39, %v254_v18  ;;  %v630_v23 = vpop.f32.mrb[9].mxu0  ;;  %v650_v24 = vpop.f32.mrb[9].mxu1  ;;  %710 = vrcp.f32 %v323_v16  ;;  %v324_v26 = vadd.f32 1.0, %v699_v19 }
 0x108   :  { %v701_v25 = vpop.eup %700  ;;  %v217_v27 = vpop.f32.mrb[10].mxu0  ;;  %712 = vrcp.f32 %v333_v20  ;;  %v572_v30 = vmul.f32 -1.442695, %v215_v21 }
 0x109   :  { %v257_v28 = vpop.f32.mrb[10].mxu1  ;;  %v334_v29 = vadd.f32 1.0, %v701_v25  ;;  %v582_v31 = vmul.f32 -1.442695, %v255_v22  ;;  %v631_v32 = vpop.f32.mrb[11].mxu0  ;;  %714 = vrcp.f32 %v324_v26  ;;  %v218_v33 = vadd.f32 %v945_v39, %v217_v27 }
 0x10a   :  { %v258_v34 = vadd.f32 %v945_v39, %v257_v28  ;;  %v651_v35 = vpop.f32.mrb[11].mxu1  ;;  %v453_v19 = vpop.permute.xlu1 %452 }
 0x10b   :  { %716 = vrcp.f32 %v334_v29  ;;  %v573_v36 = vmul.f32 -1.442695, %v218_v33 }
 0x10c   :  { %718 = vpow2.f32 %v572_v30  ;;  %v583_v42 = vmul.f32 -1.442695, %v258_v34  ;;  %v703_v43 = vpop.eup %702 }
 0x10d   :  { %720 = vpow2.f32 %v582_v31  ;;  %v705_v46 = vpop.eup %704  ;;  %v325_v47 = vadd.f32 1.0, %v703_v43  ;;  %v222_v48 = vpop.f32.mrb[12].mxu0 }
 0x10e   :  { %722 = vpow2.f32 %v573_v36  ;;  %v262_v49 = vpop.f32.mrb[12].mxu1  ;;  %v707_v50 = vpop.eup %706  ;;  %v335_v51 = vadd.f32 1.0, %v705_v46  ;;  %v223_v52 = vadd.f32 %v945_v39, %v222_v48 }
 0x10f   :  { %724 = vpow2.f32 %v583_v42  ;;  %v263_v53 = vadd.f32 %v945_v39, %v262_v49  ;;  %v634_v54 = vpop.f32.mrb[13].mxu0  ;;  %v654_v55 = vpop.f32.mrb[13].mxu1  ;;  %v326_v57 = vadd.f32 1.0, %v707_v50 }
 0x110   :  { %v709_v56 = vpop.eup %708  ;;  %726 = vrcp.f32 %v325_v47  ;;  %v225_v60 = vpop.f32.mrb[14].mxu0  ;;  %v574_v63 = vmul.f32 -1.442695, %v223_v52 }
 0x111   :  { %v265_v61 = vpop.f32.mrb[14].mxu1  ;;  %728 = vrcp.f32 %v335_v51  ;;  %v336_v62 = vadd.f32 1.0, %v709_v56  ;;  %v584_v0 = vmul.f32 -1.442695, %v263_v53  ;;  %v635_v1 = vpop.f32.mrb[15].mxu0  ;;  %v226_v4 = vadd.f32 %v945_v39, %v225_v60 }
 0x112   :  { %v711_v2 = vpop.eup %710  ;;  %730 = vrcp.f32 %v326_v57  ;;  %v266_v5 = vadd.f32 %v945_v39, %v265_v61  ;;  %v655_v6 = vpop.f32.mrb[15].mxu1 }
 0x113   :  { %v713_v7 = vpop.eup %712  ;;  %v485_v8 = vmul.f32 %v711_v2, %v940_v38  ;;  %732 = vrcp.f32 %v336_v62  ;;  %v575_v12 = vmul.f32 -1.442695, %v226_v4  ;;  %v458_v47 = vpop.permute.xlu0 %457 }
 0x114   :  { %v715_v10 = vpop.eup %714  ;;  %v495_v11 = vmul.f32 %v713_v7, %v448_v9  ;;  %734 = vpow2.f32 %v574_v63  ;;  %v585_v15 = vmul.f32 -1.442695, %v266_v5  ;;  %v463_v53 = vpop.permute.xlu1 %462 }
 0x115   :  { %v717_v16 = vpop.eup %716  ;;  %v510_v17 = vmul.f32 %v980_v3, %v485_v8  ;;  %v486_v18 = vmul.f32 %v715_v10, %v949_v41  ;;  %736 = vpow2.f32 %v584_v0  ;;  %v230_v38 = vpop.f32.mrb[16].mxu0 }
 0x116   :  { %v719_v20 = vpop.eup %718  ;;  %v496_v21 = vmul.f32 %v717_v16, %v453_v19  ;;  %v520_v22 = vmul.f32 %v980_v3, %v495_v11  ;;  %738 = vpow2.f32 %v575_v12  ;;  %v231_v26 = vadd.f32 %v945_v39, %v230_v38  ;;  %v638_v41 = vpop.f32.mrb[17].mxu0 }
 0x117   :  { %v721_v23 = vpop.eup %720  ;;  %528 = vst [vmem:[%s1073_s5] sm:$0xff] %v510_v17  ;;  %v511_v24 = vmul.f32 %v980_v3, %v486_v18  ;;  %v327_v25 = vadd.f32 1.0, %v719_v20  ;;  %740 = vpow2.f32 %v585_v15  ;;  %v233_v30 = vpop.f32.mrb[18].mxu0 }
 0x118   :  { %v723_v27 = vpop.eup %722  ;;  %v337_v28 = vadd.f32 1.0, %v721_v23  ;;  %v521_v29 = vmul.f32 %v980_v3, %v496_v21  ;;  %538 = vst [vmem:[%s1073_s5 + $0x50] sm:$0xff] %v520_v22  ;;  %v576_v33 = vmul.f32 -1.442695, %v231_v26  ;;  %v234_v34 = vadd.f32 %v945_v39, %v233_v30  ;;  %v639_v35 = vpop.f32.mrb[19].mxu0 }
 0x119   :  { %v725_v31 = vpop.eup %724  ;;  %529 = vst [vmem:[%s1073_s5 + $0x8] sm:$0xff] %v511_v24  ;;  %742 = vrcp.f32 %v327_v25  ;;  %v328_v32 = vadd.f32 1.0, %v723_v27  ;;  %v468_v6 = vpop.permute.xlu0 %467 }
 0x11a   :  { %v727_v36 = vpop.eup %726  ;;  %744 = vrcp.f32 %v337_v28  ;;  %539 = vst [vmem:[%s1073_s5 + $0x58] sm:$0xff] %v521_v29  ;;  %v338_v42 = vadd.f32 1.0, %v725_v31  ;;  %v577_v48 = vmul.f32 -1.442695, %v234_v34  ;;  %v473_v12 = vpop.permute.xlu1 %472 }
 0x11b   :  { %v729_v43 = vpop.eup %728  ;;  %v487_v46 = vmul.f32 %v727_v36, %v938_v37  ;;  %746 = vrcp.f32 %v328_v32 }
 0x11c   :  { %v731_v49 = vpop.eup %730  ;;  %748 = vrcp.f32 %v338_v42  ;;  %v497_v50 = vmul.f32 %v729_v43, %v458_v47 }
 0x11d   :  { %v733_v51 = vpop.eup %732  ;;  %v512_v39 = vmul.f32 %v980_v3, %v487_v46  ;;  %v488_v52 = vmul.f32 %v731_v49, %v947_v40  ;;  %750 = vpow2.f32 %v576_v33  ;;  %v478_v23 = vpop.permute.xlu0 %477 }
 0x11e   :  { %v735_v54 = vpop.eup %734  ;;  %v498_v55 = vmul.f32 %v733_v51, %v463_v53  ;;  %v522_v56 = vmul.f32 %v980_v3, %v497_v50  ;;  %752 = vpow2.f32 %v577_v48  ;;  %v483_v28 = vpop.permute.xlu1 %482 }
 0x11f   :  { %v737_v57 = vpop.eup %736  ;;  %530 = vst [vmem:[%s1073_s5 + $0x10] sm:$0xff] %v512_v39  ;;  %v513_v37 = vmul.f32 %v980_v3, %v488_v52  ;;  %v329_v60 = vadd.f32 1.0, %v735_v54 }
 0x120   :  { %v739_v61 = vpop.eup %738  ;;  %v523_v62 = vmul.f32 %v980_v3, %v498_v55  ;;  %540 = vst [vmem:[%s1073_s5 + $0x60] sm:$0xff] %v522_v56  ;;  %v339_v40 = vadd.f32 1.0, %v737_v57 }
 0x121   :  { %v741_v63 = vpop.eup %740  ;;  %531 = vst [vmem:[%s1073_s5 + $0x18] sm:$0xff] %v513_v37  ;;  %754 = vrcp.f32 %v329_v60  ;;  %v330_v0 = vadd.f32 1.0, %v739_v61 }
 0x122   :  { %541 = vst [vmem:[%s1073_s5 + $0x68] sm:$0xff] %v523_v62  ;;  %756 = vrcp.f32 %v339_v40  ;;  %v340_v1 = vadd.f32 1.0, %v741_v63 }
 0x123   :  { %v743_v2 = vpop.eup %742  ;;  %758 = vrcp.f32 %v330_v0 }
 0x124   :  { %v745_v4 = vpop.eup %744  ;;  %v489_v5 = vmul.f32 %v743_v2, %v957_v59  ;;  %760 = vrcp.f32 %v340_v1 }
 0x125   :  { %v747_v7 = vpop.eup %746  ;;  %v499_v8 = vmul.f32 %v745_v4, %v468_v6 }
 0x126   :  { %v749_v9 = vpop.eup %748  ;;  %v514_v10 = vmul.f32 %v980_v3, %v489_v5  ;;  %v490_v11 = vmul.f32 %v747_v7, %v955_v58 }
 0x127   :  { %v751_v15 = vpop.eup %750  ;;  %v500_v16 = vmul.f32 %v749_v9, %v473_v12  ;;  %v524_v17 = vmul.f32 %v980_v3, %v499_v8 }
 0x128   :  { %v753_v18 = vpop.eup %752  ;;  %532 = vst [vmem:[%s1073_s5 + $0x20] sm:$0xff] %v514_v10  ;;  %v515_v59 = vmul.f32 %v980_v3, %v490_v11  ;;  %v331_v19 = vadd.f32 1.0, %v751_v15 }
 0x129   :  { %v525_v20 = vmul.f32 %v980_v3, %v500_v16  ;;  %542 = vst [vmem:[%s1073_s5 + $0x70] sm:$0xff] %v524_v17  ;;  %v332_v58 = vadd.f32 1.0, %v753_v18 }
 0x12a   :  { %533 = vst [vmem:[%s1073_s5 + $0x28] sm:$0xff] %v515_v59  ;;  %762 = vrcp.f32 %v331_v19 }
 0x12b   :  { %v755_v21 = vpop.eup %754  ;;  %543 = vst [vmem:[%s1073_s5 + $0x78] sm:$0xff] %v525_v20  ;;  %764 = vrcp.f32 %v332_v58 }
 0x12c   :  { %v757_v22 = vpop.eup %756  ;;  %v491_v38 = vmul.f32 %v755_v21, %v965_v14 }
 0x12d   :  { %v759_v24 = vpop.eup %758  ;;  %v501_v25 = vmul.f32 %v757_v22, %v478_v23 }
 0x12e   :  { %v761_v26 = vpop.eup %760  ;;  %v516_v41 = vmul.f32 %v980_v3, %v491_v38  ;;  %v492_v27 = vmul.f32 %v759_v24, %v963_v13 }
 0x12f   :  { %v502_v29 = vmul.f32 %v761_v26, %v483_v28  ;;  %v526_v30 = vmul.f32 %v980_v3, %v501_v25 }
 0x130   :  { %534 = vst [vmem:[%s1073_s5 + $0x30] sm:$0xff] %v516_v41  ;;  %v517_v31 = vmul.f32 %v980_v3, %v492_v27 }
 0x131   :  { %v527_v14 = vmul.f32 %v980_v3, %v502_v29  ;;  %544 = vst [vmem:[%s1073_s5 + $0x80] sm:$0xff] %v526_v30 }
 0x132   :  { %535 = vst [vmem:[%s1073_s5 + $0x38] sm:$0xff] %v517_v31 }
 0x133   :  { %545 = vst [vmem:[%s1073_s5 + $0x88] sm:$0xff] %v527_v14 }
 0x134   :  { %v763_v13 = vpop.eup %762 }
 0x135   :  { %v765_v32 = vpop.eup %764  ;;  %v493_v33 = vmul.f32 %v763_v13, %v973_v45 }
 0x136   :  { %v494_v34 = vmul.f32 %v765_v32, %v971_v44 }
 0x137   :  { %v518_v35 = vmul.f32 %v980_v3, %v493_v33 }
 0x138   :  { %v519_v36 = vmul.f32 %v980_v3, %v494_v34 }
 0x139   :  { %536 = vst [vmem:[%s1073_s5 + $0x40] sm:$0xff] %v518_v35 }
 0x13a   :  { %537 = vst [vmem:[%s1073_s5 + $0x48] sm:$0xff] %v519_v36 }

// kernel: balsum_forward.3
= control target key start
LH: loop header
LB: loop body
LE: loop exit
PB: predicated region body
PF: predicated region fallthrough
CT: control target
= control target key end

     0   :  { %vm539_vm0 = vcmask 64512   ;;  %s1930_s1 = inlined_call_operand.vmem [shape: f32[2,8,128], index: 1, kind: input, shape index: {}]   ;;  %s1931_s0 = inlined_call_operand.vmem [shape: f32[2,128,128], index: 0, kind: input, shape index: {}]   ;;  %s1932_s2 = inlined_call_operand.vmem [shape: f32[2,128], index: 2, kind: output, shape index: {}]  }
   0x1   :  { %v1358_v0 = vld [vmem:[%s1930_s1] sm:$0xff]  ;;  %v1368_v2 = vld [vmem:[%s1930_s1 + $0x8] sm:$0xff]  ;;  %v1400_v12 = vld [vmem:[%s1931_s0 + $0x10] sm:$0xff] }
   0x2   :  { %v1363_v1 = vld [vmem:[%s1931_s0] sm:$0xff]  ;;  %v237_v3 = vmul.f32 %v1358_v0, %v1358_v0  ;;  %v238_v6 = vmul.f32 %v1368_v2, %v1368_v2  ;;  %v1386_v8 = vld [vmem:[%s1931_s0 + $0x8] sm:$0xff]  ;;  %v1405_v13 = vld [vmem:[%s1931_s0 + $0x90] sm:$0xff]  ;;  %v47_v14 = vmul.f32 %v1400_v12, %v1400_v12 }
   0x3   :  { %v45_v4 = vmul.f32 %v1363_v1, %v1363_v1  ;;  %v1377_v5 = vld [vmem:[%s1931_s0 + $0x80] sm:$0xff]  ;;  %v1391_v9 = vld [vmem:[%s1931_s0 + $0x88] sm:$0xff]  ;;  %v46_v10 = vmul.f32 %v1386_v8, %v1386_v8  ;;  %v63_v15 = vmul.f32 %v1405_v13, %v1405_v13  ;;  %v1414_v16 = vld [vmem:[%s1931_s0 + $0x18] sm:$0xff] }
   0x4   :  { %239 = vadd.xlane.f32.xlu0 %v237_v3  ;;  %v61_v7 = vmul.f32 %v1377_v5, %v1377_v5  ;;  %v62_v11 = vmul.f32 %v1391_v9, %v1391_v9  ;;  %v1419_v17 = vld [vmem:[%s1931_s0 + $0x98] sm:$0xff]  ;;  %v48_v18 = vmul.f32 %v1414_v16, %v1414_v16  ;;  %v1428_v20 = vld [vmem:[%s1931_s0 + $0x20] sm:$0xff]  ;;  %v1442_v24 = vld [vmem:[%s1931_s0 + $0x28] sm:$0xff] }
   0x5   :  { %77 = vadd.xlane.f32.xlu1 %v45_v4  ;;  %v64_v19 = vmul.f32 %v1419_v17, %v1419_v17  ;;  %v1433_v21 = vld [vmem:[%s1931_s0 + $0xa0] sm:$0xff]  ;;  %v49_v22 = vmul.f32 %v1428_v20, %v1428_v20  ;;  %v1447_v25 = vld [vmem:[%s1931_s0 + $0xa8] sm:$0xff]  ;;  %v50_v26 = vmul.f32 %v1442_v24, %v1442_v24  ;;  %v1456_v28 = vld [vmem:[%s1931_s0 + $0x30] sm:$0xff] }
   0x6   :  { %v65_v23 = vmul.f32 %v1433_v21, %v1433_v21  ;;  %v66_v27 = vmul.f32 %v1447_v25, %v1447_v25  ;;  %v1461_v29 = vld [vmem:[%s1931_s0 + $0xb0] sm:$0xff]  ;;  %v51_v30 = vmul.f32 %v1456_v28, %v1456_v28  ;;  %v1470_v32 = vld [vmem:[%s1931_s0 + $0x38] sm:$0xff]  ;;  %v1484_v36 = vld [vmem:[%s1931_s0 + $0x40] sm:$0xff] }
   0x7   :  { %v67_v31 = vmul.f32 %v1461_v29, %v1461_v29  ;;  %v1475_v33 = vld [vmem:[%s1931_s0 + $0xb8] sm:$0xff]  ;;  %v52_v34 = vmul.f32 %v1470_v32, %v1470_v32  ;;  %v1489_v37 = vld [vmem:[%s1931_s0 + $0xc0] sm:$0xff]  ;;  %v53_v38 = vmul.f32 %v1484_v36, %v1484_v36  ;;  %v1498_v40 = vld [vmem:[%s1931_s0 + $0x48] sm:$0xff] }
   0x8   :  { %241 = vadd.xlane.f32.xlu0 %v238_v6  ;;  %v68_v35 = vmul.f32 %v1475_v33, %v1475_v33  ;;  %v69_v39 = vmul.f32 %v1489_v37, %v1489_v37  ;;  %v1503_v41 = vld [vmem:[%s1931_s0 + $0xc8] sm:$0xff]  ;;  %v54_v42 = vmul.f32 %v1498_v40, %v1498_v40  ;;  %v1512_v44 = vld [vmem:[%s1931_s0 + $0x50] sm:$0xff]  ;;  %v1526_v48 = vld [vmem:[%s1931_s0 + $0x58] sm:$0xff] }
   0x9   :  { %109 = vadd.xlane.f32.xlu1 %v61_v7  ;;  %v70_v43 = vmul.f32 %v1503_v41, %v1503_v41  ;;  %v1517_v45 = vld [vmem:[%s1931_s0 + $0xd0] sm:$0xff]  ;;  %v55_v46 = vmul.f32 %v1512_v44, %v1512_v44  ;;  %v1531_v49 = vld [vmem:[%s1931_s0 + $0xd8] sm:$0xff]  ;;  %v56_v50 = vmul.f32 %v1526_v48, %v1526_v48  ;;  %v1540_v52 = vld [vmem:[%s1931_s0 + $0x60] sm:$0xff] }
   0xa   :  { %v71_v47 = vmul.f32 %v1517_v45, %v1517_v45  ;;  %v72_v51 = vmul.f32 %v1531_v49, %v1531_v49  ;;  %v1545_v53 = vld [vmem:[%s1931_s0 + $0xe0] sm:$0xff]  ;;  %v57_v54 = vmul.f32 %v1540_v52, %v1540_v52  ;;  %v1554_v56 = vld [vmem:[%s1931_s0 + $0x68] sm:$0xff]  ;;  %v1568_v60 = vld [vmem:[%s1931_s0 + $0x70] sm:$0xff] }
   0xb   :  { %v73_v55 = vmul.f32 %v1545_v53, %v1545_v53  ;;  %v1559_v57 = vld [vmem:[%s1931_s0 + $0xe8] sm:$0xff]  ;;  %v58_v58 = vmul.f32 %v1554_v56, %v1554_v56  ;;  %v1573_v61 = vld [vmem:[%s1931_s0 + $0xf0] sm:$0xff]  ;;  %v59_v62 = vmul.f32 %v1568_v60, %v1568_v60  ;;  %v1582_v3 = vld [vmem:[%s1931_s0 + $0x78] sm:$0xff] }
   0xc   :  { %79 = vadd.xlane.f32.xlu0 %v46_v10  ;;  %v74_v59 = vmul.f32 %v1559_v57, %v1559_v57  ;;  %v75_v63 = vmul.f32 %v1573_v61, %v1573_v61  ;;  %v1587_v4 = vld [vmem:[%s1931_s0 + $0xf8] sm:$0xff]  ;;  %v60_v6 = vmul.f32 %v1582_v3, %v1582_v3 }
   0xd   :  { %111 = vadd.xlane.f32.xlu1 %v62_v11  ;;  %v76_v7 = vmul.f32 %v1587_v4, %v1587_v4 }
  0x10   :  { %81 = vadd.xlane.f32.xlu0 %v47_v14 }
  0x11   :  { %113 = vadd.xlane.f32.xlu1 %v63_v15 }
  0x14   :  { %83 = vadd.xlane.f32.xlu0 %v48_v18 }
  0x15   :  { %115 = vadd.xlane.f32.xlu1 %v64_v19 }
  0x18   :  { %85 = vadd.xlane.f32.xlu0 %v49_v22 }
  0x19   :  { %117 = vadd.xlane.f32.xlu1 %v65_v23 }
  0x1c   :  { %87 = vadd.xlane.f32.xlu0 %v50_v26 }
  0x1d   :  { %119 = vadd.xlane.f32.xlu1 %v66_v27 }
  0x20   :  { %89 = vadd.xlane.f32.xlu0 %v51_v30 }
  0x21   :  { %121 = vadd.xlane.f32.xlu1 %v67_v31 }
  0x24   :  { %91 = vadd.xlane.f32.xlu0 %v52_v34 }
  0x25   :  { %123 = vadd.xlane.f32.xlu1 %v68_v35 }
  0x28   :  { %93 = vadd.xlane.f32.xlu0 %v53_v38 }
  0x29   :  { %125 = vadd.xlane.f32.xlu1 %v69_v39 }
  0x2c   :  { %95 = vadd.xlane.f32.xlu0 %v54_v42 }
  0x2d   :  { %127 = vadd.xlane.f32.xlu1 %v70_v43 }
  0x30   :  { %97 = vadd.xlane.f32.xlu0 %v55_v46 }
  0x31   :  { %129 = vadd.xlane.f32.xlu1 %v71_v47 }
  0x34   :  { %99 = vadd.xlane.f32.xlu0 %v56_v50 }
  0x35   :  { %131 = vadd.xlane.f32.xlu1 %v72_v51 }
  0x38   :  { %101 = vadd.xlane.f32.xlu0 %v57_v54 }
  0x39   :  { %133 = vadd.xlane.f32.xlu1 %v73_v55 }
  0x3c   :  { %103 = vadd.xlane.f32.xlu0 %v58_v58 }
  0x3d   :  { %135 = vadd.xlane.f32.xlu1 %v74_v59 }
  0x40   :  { %105 = vadd.xlane.f32.xlu0 %v59_v62 }
  0x41   :  { %137 = vadd.xlane.f32.xlu1 %v75_v63 }
  0x44   :  { %107 = vadd.xlane.f32.xlu0 %v60_v6 }
  0x45   :  { %139 = vadd.xlane.f32.xlu1 %v76_v7 }
  0x91   :  { %v240_v10 = vpop.xlane.xlu0 %239 }
  0x92   :  { %v78_v11 = vpop.xlane.xlu1 %77  ;;  %v243_v14 = vmax.f32 %v240_v10, 1e-24 }
  0x93   :  { %v141_v15 = vmax.f32 %v78_v11, 1e-24 }
  0x94   :  { %1208 = vrsqrt.f32 %v243_v14 }
  0x95   :  { %1210 = vrsqrt.f32 %v141_v15  ;;  %v242_v18 = vpop.xlane.xlu0 %241 }
  0x96   :  { %v110_v19 = vpop.xlane.xlu1 %109  ;;  %v244_v22 = vmax.f32 %v242_v18, 1e-24 }
  0x97   :  { %v157_v23 = vmax.f32 %v110_v19, 1e-24 }
  0x98   :  { %1212 = vrsqrt.f32 %v244_v22 }
  0x99   :  { %1214 = vrsqrt.f32 %v157_v23  ;;  %v80_v26 = vpop.xlane.xlu0 %79 }
  0x9a   :  { %v112_v27 = vpop.xlane.xlu1 %111  ;;  %v142_v30 = vmax.f32 %v80_v26, 1e-24 }
  0x9b   :  { %v158_v31 = vmax.f32 %v112_v27, 1e-24 }
  0x9c   :  { %1216 = vrsqrt.f32 %v142_v30 }
  0x9d   :  { %1218 = vrsqrt.f32 %v158_v31  ;;  %v82_v34 = vpop.xlane.xlu0 %81 }
  0x9e   :  { %v114_v35 = vpop.xlane.xlu1 %113  ;;  %v1209_v38 = vpop.eup %1208  ;;  %v143_v39 = vmax.f32 %v82_v34, 1e-24 }
  0x9f   :  { %v159_v42 = vmax.f32 %v114_v35, 1e-24  ;;  %v1211_v43 = vpop.eup %1210  ;;  %v247_v46 = vmul.f32 %v1209_v38, %v1358_v0 }
  0xa0   :  { %1220 = vrsqrt.f32 %v143_v39  ;;  %v205_v47 = vmul.f32 %v1211_v43, %v1363_v1 }
  0xa1   :  { %1222 = vrsqrt.f32 %v159_v42  ;;  %1156 = vmatprep.subr.mxu0 %v247_v46  ;;  %v84_v50 = vpop.xlane.xlu0 %83 }
  0xa2   :  { %v116_v51 = vpop.xlane.xlu1 %115  ;;  %v1213_v54 = vpop.eup %1212  ;;  %v144_v55 = vmax.f32 %v84_v50, 1e-24  ;;  %1158 = vmatprep.mubr.f32.mxu0 %v205_v47  ;;  %1157 = vmatpush3.xpose.msra.mxu0 %v247_v46 }
  0xa3   :  { %v160_v58 = vmax.f32 %v116_v51, 1e-24  ;;  %v1215_v59 = vpop.eup %1214  ;;  %v248_v62 = vmul.f32 %v1213_v54, %v1368_v2 }
  0xa4   :  { %1224 = vrsqrt.f32 %v144_v55  ;;  %v221_v63 = vmul.f32 %v1215_v59, %v1377_v5 }
  0xa5   :  { %1226 = vrsqrt.f32 %v160_v58  ;;  %1182 = vmatprep.subr.mxu1 %v248_v62  ;;  %v86_v0 = vpop.xlane.xlu0 %85 }
  0xa6   :  { %v118_v6 = vpop.xlane.xlu1 %117  ;;  %v1217_v1 = vpop.eup %1216  ;;  %v145_v7 = vmax.f32 %v86_v0, 1e-24  ;;  %1184 = vmatprep.mubr.f32.mxu1 %v221_v63  ;;  %1183 = vmatpush3.xpose.msra.mxu1 %v248_v62 }
  0xa7   :  { %v161_v10 = vmax.f32 %v118_v6, 1e-24  ;;  %v1219_v11 = vpop.eup %1218  ;;  %v206_v14 = vmul.f32 %v1217_v1, %v1386_v8 }
  0xa8   :  { %1228 = vrsqrt.f32 %v145_v7  ;;  %v222_v15 = vmul.f32 %v1219_v11, %v1391_v9 }
  0xa9   :  { %1230 = vrsqrt.f32 %v161_v10  ;;  %v88_v2 = vpop.xlane.xlu0 %87  ;;  %1159 = vmatmul.mubr.f32.vlgmr.msra.gmra.mrb[0].mxu0 %v206_v14 }
  0xaa   :  { %v120_v18 = vpop.xlane.xlu1 %119  ;;  %v1221_v5 = vpop.eup %1220  ;;  %v146_v19 = vmax.f32 %v88_v2, 1e-24  ;;  %1185 = vmatmul.mubr.f32.vlgmr.msra.gmra.mrb[0].mxu1 %v222_v15 }
  0xab   :  { %v162_v22 = vmax.f32 %v120_v18, 1e-24  ;;  %v1223_v23 = vpop.eup %1222  ;;  %v207_v26 = vmul.f32 %v1221_v5, %v1400_v12 }
  0xac   :  { %1232 = vrsqrt.f32 %v146_v19  ;;  %v223_v27 = vmul.f32 %v1223_v23, %v1405_v13 }
  0xad   :  { %1234 = vrsqrt.f32 %v162_v22  ;;  %v90_v30 = vpop.xlane.xlu0 %89  ;;  %1161 = vmatprep.mubr.f32.mxu0 %v207_v26 }
  0xae   :  { %v122_v8 = vpop.xlane.xlu1 %121  ;;  %v1225_v31 = vpop.eup %1224  ;;  %v147_v9 = vmax.f32 %v90_v30, 1e-24  ;;  %1187 = vmatprep.mubr.f32.mxu1 %v223_v27 }
  0xaf   :  { %v163_v34 = vmax.f32 %v122_v8, 1e-24  ;;  %v1227_v35 = vpop.eup %1226  ;;  %v208_v38 = vmul.f32 %v1225_v31, %v1414_v16 }
  0xb0   :  { %1236 = vrsqrt.f32 %v147_v9  ;;  %v224_v39 = vmul.f32 %v1227_v35, %v1419_v17 }
  0xb1   :  { %1238 = vrsqrt.f32 %v163_v34  ;;  %v92_v42 = vpop.xlane.xlu0 %91  ;;  %1162 = vmatmul.mubr.f32.gmra.mrb[2].mxu0 %v208_v38 }
  0xb2   :  { %v124_v12 = vpop.xlane.xlu1 %123  ;;  %v1229_v43 = vpop.eup %1228  ;;  %v148_v13 = vmax.f32 %v92_v42, 1e-24  ;;  %1188 = vmatmul.mubr.f32.gmra.mrb[2].mxu1 %v224_v39 }
  0xb3   :  { %v164_v46 = vmax.f32 %v124_v12, 1e-24  ;;  %v1231_v47 = vpop.eup %1230  ;;  %v209_v50 = vmul.f32 %v1229_v43, %v1428_v20 }
  0xb4   :  { %1240 = vrsqrt.f32 %v148_v13  ;;  %v225_v51 = vmul.f32 %v1231_v47, %v1433_v21 }
  0xb5   :  { %1242 = vrsqrt.f32 %v164_v46  ;;  %v94_v54 = vpop.xlane.xlu0 %93  ;;  %1164 = vmatprep.mubr.f32.mxu0 %v209_v50 }
  0xb6   :  { %v126_v16 = vpop.xlane.xlu1 %125  ;;  %v1233_v55 = vpop.eup %1232  ;;  %v149_v17 = vmax.f32 %v94_v54, 1e-24  ;;  %1190 = vmatprep.mubr.f32.mxu1 %v225_v51 }
  0xb7   :  { %v165_v58 = vmax.f32 %v126_v16, 1e-24  ;;  %v1235_v59 = vpop.eup %1234  ;;  %v210_v62 = vmul.f32 %v1233_v55, %v1442_v24 }
  0xb8   :  { %1244 = vrsqrt.f32 %v149_v17  ;;  %v226_v63 = vmul.f32 %v1235_v59, %v1447_v25 }
  0xb9   :  { %1246 = vrsqrt.f32 %v165_v58  ;;  %v96_v0 = vpop.xlane.xlu0 %95  ;;  %1165 = vmatmul.mubr.f32.gmra.mrb[4].mxu0 %v210_v62 }
  0xba   :  { %v128_v20 = vpop.xlane.xlu1 %127  ;;  %v1237_v6 = vpop.eup %1236  ;;  %v150_v21 = vmax.f32 %v96_v0, 1e-24  ;;  %1191 = vmatmul.mubr.f32.gmra.mrb[4].mxu1 %v226_v63 }
  0xbb   :  { %v166_v1 = vmax.f32 %v128_v20, 1e-24  ;;  %v1239_v7 = vpop.eup %1238  ;;  %v211_v10 = vmul.f32 %v1237_v6, %v1456_v28 }
  0xbc   :  { %1248 = vrsqrt.f32 %v150_v21  ;;  %v227_v11 = vmul.f32 %v1239_v7, %v1461_v29 }
  0xbd   :  { %1250 = vrsqrt.f32 %v166_v1  ;;  %v98_v14 = vpop.xlane.xlu0 %97  ;;  %1167 = vmatprep.mubr.f32.mxu0 %v211_v10 }
  0xbe   :  { %v130_v24 = vpop.xlane.xlu1 %129  ;;  %v1241_v15 = vpop.eup %1240  ;;  %v151_v25 = vmax.f32 %v98_v14, 1e-24  ;;  %1193 = vmatprep.mubr.f32.mxu1 %v227_v11 }
  0xbf   :  { %v167_v2 = vmax.f32 %v130_v24, 1e-24  ;;  %v1243_v18 = vpop.eup %1242  ;;  %v212_v5 = vmul.f32 %v1241_v15, %v1470_v32 }
  0xc0   :  { %1252 = vrsqrt.f32 %v151_v25  ;;  %v228_v19 = vmul.f32 %v1243_v18, %v1475_v33 }
  0xc1   :  { %1254 = vrsqrt.f32 %v167_v2  ;;  %v100_v22 = vpop.xlane.xlu0 %99  ;;  %1168 = vmatmul.mubr.f32.gmra.mrb[6].mxu0 %v212_v5 }
  0xc2   :  { %v132_v28 = vpop.xlane.xlu1 %131  ;;  %v1245_v23 = vpop.eup %1244  ;;  %v152_v29 = vmax.f32 %v100_v22, 1e-24  ;;  %1194 = vmatmul.mubr.f32.gmra.mrb[6].mxu1 %v228_v19 }
  0xc3   :  { %v168_v26 = vmax.f32 %v132_v28, 1e-24  ;;  %v1247_v27 = vpop.eup %1246  ;;  %v213_v30 = vmul.f32 %v1245_v23, %v1484_v36 }
  0xc4   :  { %1256 = vrsqrt.f32 %v152_v29  ;;  %v229_v8 = vmul.f32 %v1247_v27, %v1489_v37 }
  0xc5   :  { %1258 = vrsqrt.f32 %v168_v26  ;;  %v102_v31 = vpop.xlane.xlu0 %101  ;;  %1170 = vmatprep.mubr.f32.mxu0 %v213_v30 }
  0xc6   :  { %v134_v32 = vpop.xlane.xlu1 %133  ;;  %v1249_v9 = vpop.eup %1248  ;;  %v153_v33 = vmax.f32 %v102_v31, 1e-24  ;;  %1196 = vmatprep.mubr.f32.mxu1 %v229_v8 }
  0xc7   :  { %v169_v34 = vmax.f32 %v134_v32, 1e-24  ;;  %v1251_v35 = vpop.eup %1250  ;;  %v214_v38 = vmul.f32 %v1249_v9, %v1498_v40 }
  0xc8   :  { %1260 = vrsqrt.f32 %v153_v33  ;;  %v230_v39 = vmul.f32 %v1251_v35, %v1503_v41 }
  0xc9   :  { %1262 = vrsqrt.f32 %v169_v34  ;;  %v104_v42 = vpop.xlane.xlu0 %103  ;;  %1171 = vmatmul.mubr.f32.gmra.mrb[8].mxu0 %v214_v38 }
  0xca   :  { %v136_v36 = vpop.xlane.xlu1 %135  ;;  %v1253_v12 = vpop.eup %1252  ;;  %v154_v37 = vmax.f32 %v104_v42, 1e-24  ;;  %1197 = vmatmul.mubr.f32.gmra.mrb[8].mxu1 %v230_v39 }
  0xcb   :  { %v170_v43 = vmax.f32 %v136_v36, 1e-24  ;;  %v1255_v13 = vpop.eup %1254  ;;  %v215_v46 = vmul.f32 %v1253_v12, %v1512_v44 }
  0xcc   :  { %1264 = vrsqrt.f32 %v154_v37  ;;  %v231_v47 = vmul.f32 %v1255_v13, %v1517_v45 }
  0xcd   :  { %1266 = vrsqrt.f32 %v170_v43  ;;  %v106_v50 = vpop.xlane.xlu0 %105  ;;  %1173 = vmatprep.mubr.f32.mxu0 %v215_v46 }
  0xce   :  { %v138_v40 = vpop.xlane.xlu1 %137  ;;  %v1257_v51 = vpop.eup %1256  ;;  %v155_v41 = vmax.f32 %v106_v50, 1e-24  ;;  %1199 = vmatprep.mubr.f32.mxu1 %v231_v47 }
  0xcf   :  { %v171_v54 = vmax.f32 %v138_v40, 1e-24  ;;  %v1259_v16 = vpop.eup %1258  ;;  %v216_v55 = vmul.f32 %v1257_v51, %v1526_v48 }
  0xd0   :  { %1268 = vrsqrt.f32 %v155_v41  ;;  %v232_v17 = vmul.f32 %v1259_v16, %v1531_v49 }
  0xd1   :  { %1270 = vrsqrt.f32 %v171_v54  ;;  %v108_v58 = vpop.xlane.xlu0 %107  ;;  %1174 = vmatmul.mubr.f32.gmra.mrb[10].mxu0 %v216_v55 }
  0xd2   :  { %v140_v44 = vpop.xlane.xlu1 %139  ;;  %v1261_v59 = vpop.eup %1260  ;;  %v156_v45 = vmax.f32 %v108_v58, 1e-24  ;;  %1200 = vmatmul.mubr.f32.gmra.mrb[10].mxu1 %v232_v17 }
  0xd3   :  { %v172_v62 = vmax.f32 %v140_v44, 1e-24  ;;  %v1263_v63 = vpop.eup %1262  ;;  %v217_v0 = vmul.f32 %v1261_v59, %v1540_v52 }
  0xd4   :  { %1272 = vrsqrt.f32 %v156_v45  ;;  %v233_v20 = vmul.f32 %v1263_v63, %v1545_v53 }
  0xd5   :  { %1274 = vrsqrt.f32 %v172_v62  ;;  %1176 = vmatprep.mubr.f32.mxu0 %v217_v0 }
  0xd6   :  { %v1265_v48 = vpop.eup %1264  ;;  %1202 = vmatprep.mubr.f32.mxu1 %v233_v20 }
  0xd7   :  { %v1267_v6 = vpop.eup %1266  ;;  %v218_v49 = vmul.f32 %v1265_v48, %v1554_v56 }
  0xd8   :  { %v234_v21 = vmul.f32 %v1267_v6, %v1559_v57 }
  0xd9   :  { %1177 = vmatmul.mubr.f32.gmra.mrb[12].mxu0 %v218_v49 }
  0xda   :  { %v1269_v1 = vpop.eup %1268  ;;  %1203 = vmatmul.mubr.f32.gmra.mrb[12].mxu1 %v234_v21 }
  0xdb   :  { %v1271_v7 = vpop.eup %1270  ;;  %v219_v10 = vmul.f32 %v1269_v1, %v1568_v60 }
  0xdc   :  { %v235_v52 = vmul.f32 %v1271_v7, %v1573_v61 }
  0xdd   :  { %1179 = vmatprep.mubr.f32.mxu0 %v219_v10 }
  0xde   :  { %v1273_v11 = vpop.eup %1272  ;;  %1205 = vmatprep.mubr.f32.mxu1 %v235_v52 }
  0xdf   :  { %v1275_v53 = vpop.eup %1274  ;;  %v220_v14 = vmul.f32 %v1273_v11, %v1582_v3 }
  0xe0   :  { %v236_v24 = vmul.f32 %v1275_v53, %v1587_v4 }
  0xe1   :  { %1180 = vmatmul.mubr.f32.gmra.mrb[14].mxu0 %v220_v14 }
  0xe2   :  { %1206 = vmatmul.mubr.f32.gmra.mrb[14].mxu1 %v236_v24 }
 0x17c   :  { %v1627_v56 = vpop.f32.mrb[0].mxu0 }
 0x17d   :  { %v1629_v57 = vpop.f32.mrb[0].mxu1  ;;  %v1631_v15 = vpop.f32.mrb[1].mxu0  ;;  %v543_v60 = vsel %vm539_vm0, %v1627_v56, 0.0 }
 0x17e   :  { %v1635_v61 = vpop.f32.mrb[1].mxu1  ;;  %544 = vadd.xlane.f32.xlu1 %v543_v60  ;;  %v540_v3 = vsel %vm539_vm0, %v1631_v15, 0.0  ;;  %v591_v4 = vsel %vm539_vm0, %v1629_v57, 0.0 }
 0x17f   :  { %541 = vadd.xlane.f32.xlu0 %v540_v3  ;;  %v588_v25 = vsel %vm539_vm0, %v1635_v61, 0.0 }
 0x182   :  { %592 = vadd.xlane.f32.xlu1 %v591_v4 }
 0x183   :  { %589 = vadd.xlane.f32.xlu0 %v588_v25 }
 0x184   :  { %v1643_v2 = vpop.f32.mrb[2].mxu0 }
 0x185   :  { %v1645_v18 = vpop.f32.mrb[2].mxu1  ;;  %v1647_v5 = vpop.f32.mrb[3].mxu0  ;;  %v549_v19 = vsel %vm539_vm0, %v1643_v2, 0.0 }
 0x186   :  { %v1651_v22 = vpop.f32.mrb[3].mxu1  ;;  %v597_v28 = vsel %vm539_vm0, %v1645_v18, 0.0  ;;  %v546_v29 = vsel %vm539_vm0, %v1647_v5, 0.0 }
 0x187   :  { %598 = vadd.xlane.f32.xlu1 %v597_v28  ;;  %550 = vadd.xlane.f32.xlu0 %v549_v19  ;;  %v594_v23 = vsel %vm539_vm0, %v1651_v22, 0.0 }
 0x18b   :  { %595 = vadd.xlane.f32.xlu1 %v594_v23  ;;  %547 = vadd.xlane.f32.xlu0 %v546_v29 }
 0x18c   :  { %v1659_v26 = vpop.f32.mrb[4].mxu0 }
 0x18d   :  { %v1661_v27 = vpop.f32.mrb[4].mxu1  ;;  %v1663_v30 = vpop.f32.mrb[5].mxu0  ;;  %v555_v8 = vsel %vm539_vm0, %v1659_v26, 0.0 }
 0x18e   :  { %v1667_v31 = vpop.f32.mrb[5].mxu1  ;;  %v603_v32 = vsel %vm539_vm0, %v1661_v27, 0.0  ;;  %v552_v33 = vsel %vm539_vm0, %v1663_v30, 0.0 }
 0x18f   :  { %604 = vadd.xlane.f32.xlu1 %v603_v32  ;;  %556 = vadd.xlane.f32.xlu0 %v555_v8  ;;  %v600_v9 = vsel %vm539_vm0, %v1667_v31, 0.0 }
 0x193   :  { %601 = vadd.xlane.f32.xlu1 %v600_v9  ;;  %553 = vadd.xlane.f32.xlu0 %v552_v33 }
 0x194   :  { %v1675_v34 = vpop.f32.mrb[6].mxu0 }
 0x195   :  { %v1677_v35 = vpop.f32.mrb[6].mxu1  ;;  %v1679_v38 = vpop.f32.mrb[7].mxu0  ;;  %v561_v39 = vsel %vm539_vm0, %v1675_v34, 0.0 }
 0x196   :  { %v1683_v42 = vpop.f32.mrb[7].mxu1  ;;  %v609_v36 = vsel %vm539_vm0, %v1677_v35, 0.0  ;;  %v558_v37 = vsel %vm539_vm0, %v1679_v38, 0.0 }
 0x197   :  { %610 = vadd.xlane.f32.xlu1 %v609_v36  ;;  %562 = vadd.xlane.f32.xlu0 %v561_v39  ;;  %v606_v12 = vsel %vm539_vm0, %v1683_v42, 0.0  ;;  %v733_v39 = vmul.f32 %v1627_v56, %v1627_v56 }
 0x19b   :  { %607 = vadd.xlane.f32.xlu1 %v606_v12  ;;  %559 = vadd.xlane.f32.xlu0 %v558_v37  ;;  %v732_v12 = vmul.f32 %v1631_v15, %v1631_v15  ;;  %v748_v15 = vmul.f32 %v1635_v61, %v1635_v61  ;;  %v751_v61 = vmul.f32 %v1645_v18, %v1645_v18 }
 0x19c   :  { %v1691_v43 = vpop.f32.mrb[8].mxu0  ;;  %v750_v18 = vmul.f32 %v1651_v22, %v1651_v22 }
 0x19d   :  { %v1693_v13 = vpop.f32.mrb[8].mxu1  ;;  %v1695_v46 = vpop.f32.mrb[9].mxu0  ;;  %v567_v47 = vsel %vm539_vm0, %v1691_v43, 0.0 }
 0x19e   :  { %v1699_v50 = vpop.f32.mrb[9].mxu1  ;;  %v615_v40 = vsel %vm539_vm0, %v1693_v13, 0.0  ;;  %v564_v41 = vsel %vm539_vm0, %v1695_v46, 0.0 }
 0x19f   :  { %616 = vadd.xlane.f32.xlu1 %v615_v40  ;;  %568 = vadd.xlane.f32.xlu0 %v567_v47  ;;  %v612_v51 = vsel %vm539_vm0, %v1699_v50, 0.0 }
 0x1a3   :  { %613 = vadd.xlane.f32.xlu1 %v612_v51  ;;  %565 = vadd.xlane.f32.xlu0 %v564_v41 }
 0x1a4   :  { %v1707_v54 = vpop.f32.mrb[10].mxu0 }
 0x1a5   :  { %v1709_v16 = vpop.f32.mrb[10].mxu1  ;;  %v1711_v55 = vpop.f32.mrb[11].mxu0  ;;  %v573_v17 = vsel %vm539_vm0, %v1707_v54, 0.0 }
 0x1a6   :  { %v1715_v58 = vpop.f32.mrb[11].mxu1  ;;  %v621_v44 = vsel %vm539_vm0, %v1709_v16, 0.0  ;;  %v570_v45 = vsel %vm539_vm0, %v1711_v55, 0.0 }
 0x1a7   :  { %622 = vadd.xlane.f32.xlu1 %v621_v44  ;;  %574 = vadd.xlane.f32.xlu0 %v573_v17  ;;  %v618_v59 = vsel %vm539_vm0, %v1715_v58, 0.0 }
 0x1ab   :  { %619 = vadd.xlane.f32.xlu1 %v618_v59  ;;  %571 = vadd.xlane.f32.xlu0 %v570_v45  ;;  %v749_v59 = vmul.f32 %v1629_v57, %v1629_v57 }
 0x1ac   :  { %v1723_v62 = vpop.f32.mrb[12].mxu0 }
 0x1ad   :  { %v1725_v63 = vpop.f32.mrb[12].mxu1  ;;  %v1727_v0 = vpop.f32.mrb[13].mxu0  ;;  %v579_v20 = vsel %vm539_vm0, %v1723_v62, 0.0 }
 0x1ae   :  { %v1731_v48 = vpop.f32.mrb[13].mxu1  ;;  %v627_v6 = vsel %vm539_vm0, %v1725_v63, 0.0  ;;  %v576_v21 = vsel %vm539_vm0, %v1727_v0, 0.0 }
 0x1af   :  { %628 = vadd.xlane.f32.xlu1 %v627_v6  ;;  %580 = vadd.xlane.f32.xlu0 %v579_v20  ;;  %v624_v49 = vsel %vm539_vm0, %v1731_v48, 0.0 }
 0x1b3   :  { %625 = vadd.xlane.f32.xlu1 %v624_v49  ;;  %577 = vadd.xlane.f32.xlu0 %v576_v21 }
 0x1b4   :  { %v1739_v1 = vpop.f32.mrb[14].mxu0 }
 0x1b5   :  { %v1741_v7 = vpop.f32.mrb[14].mxu1  ;;  %v1743_v10 = vpop.f32.mrb[15].mxu0  ;;  %v585_v14 = vsel %vm539_vm0, %v1739_v1, 0.0 }
 0x1b6   :  { %v1745_v52 = vpop.f32.mrb[15].mxu1  ;;  %v582_v11 = vsel %vm539_vm0, %v1743_v10, 0.0  ;;  %v633_v24 = vsel %vm539_vm0, %v1741_v7, 0.0 }
 0x1b7   :  { %583 = vadd.xlane.f32.xlu0 %v582_v11  ;;  %v630_v53 = vsel %vm539_vm0, %v1745_v52, 0.0 }
 0x1b8   :  { %631 = vadd.xlane.f32.xlu1 %v630_v53 }
 0x1bb   :  { %586 = vadd.xlane.f32.xlu0 %v585_v14 }
 0x1bc   :  { %634 = vadd.xlane.f32.xlu1 %v633_v24 }
 0x20b   :  { %v545_v60 = vpop.xlane.xlu1 %544 }
 0x20c   :  { %vm637_vm1 = vcmp.eq.f32.partialorder %v545_v60, 0.0  ;;  %v542_v3 = vpop.xlane.xlu0 %541 }
 0x20d   :  { %v669_v4 = vsel %vm637_vm1, 1.0, %v545_v60  ;;  %vm636_vm2 = vcmp.eq.f32.partialorder %v542_v3, 0.0 }
 0x20e   :  { %1276 = vrcp.f32 %v669_v4  ;;  %v668_v25 = vsel %vm636_vm2, 1.0, %v542_v3 }
 0x20f   :  { %1278 = vrcp.f32 %v668_v25  ;;  %v593_v19 = vpop.xlane.xlu1 %592 }
 0x210   :  { %vm653_vm3 = vcmp.eq.f32.partialorder %v593_v19, 0.0  ;;  %v590_v28 = vpop.xlane.xlu0 %589 }
 0x211   :  { %v685_v23 = vsel %vm653_vm3, 1.0, %v593_v19  ;;  %vm652_vm4 = vcmp.eq.f32.partialorder %v590_v28, 0.0  ;;  %v735_v19 = vmul.f32 %v1643_v2, %v1643_v2  ;;  %v734_v2 = vmul.f32 %v1647_v5, %v1647_v5 }
 0x212   :  { %1280 = vrcp.f32 %v685_v23  ;;  %v684_v29 = vsel %vm652_vm4, 1.0, %v590_v28 }
 0x213   :  { %1282 = vrcp.f32 %v684_v29 }
 0x214   :  { %v599_v8 = vpop.xlane.xlu1 %598  ;;  %v551_v32 = vpop.xlane.xlu0 %550 }
 0x215   :  { %vm655_vm5 = vcmp.eq.f32.partialorder %v599_v8, 0.0  ;;  %vm639_vm6 = vcmp.eq.f32.partialorder %v551_v32, 0.0 }
 0x216   :  { %v687_v9 = vsel %vm655_vm5, 1.0, %v599_v8  ;;  %v671_v33 = vsel %vm639_vm6, 1.0, %v551_v32 }
 0x217   :  { %1284 = vrcp.f32 %v687_v9 }
 0x218   :  { %v1277_v36 = vpop.eup %1276  ;;  %1286 = vrcp.f32 %v671_v33  ;;  %v596_v37 = vpop.xlane.xlu1 %595 }
 0x219   :  { %v548_v47 = vpop.xlane.xlu0 %547  ;;  %v1279_v40 = vpop.eup %1278  ;;  %vm654_vm7 = vcmp.eq.f32.partialorder %v596_v37, 0.0  ;;  %v765_v51 = vmul.f32 %v1277_v36, %v733_v39 }
 0x21a   :  { %vm638_vm8 = vcmp.eq.f32.partialorder %v548_v47, 0.0  ;;  %v686_v41 = vsel %vm654_vm7, 1.0, %v596_v37  ;;  %v764_v44 = vmul.f32 %v1279_v40, %v732_v12 }
 0x21b   :  { %v670_v17 = vsel %vm638_vm8, 1.0, %v548_v47  ;;  %1288 = vrcp.f32 %v686_v41  ;;  %v799_v56 = vsel %vm539_vm0, %v765_v51, 0.0  ;;  %v753_v41 = vmul.f32 %v1661_v27, %v1661_v27 }
 0x21c   :  { %v1281_v45 = vpop.eup %1280  ;;  %1290 = vrcp.f32 %v670_v17  ;;  %v605_v20 = vpop.xlane.xlu1 %604  ;;  %800 = vadd.xlane.f32.xlu1 %v799_v56  ;;  %v796_v49 = vsel %vm539_vm0, %v764_v44, 0.0  ;;  %v737_v56 = vmul.f32 %v1659_v26, %v1659_v26 }
 0x21d   :  { %v557_v6 = vpop.xlane.xlu0 %556  ;;  %v1283_v21 = vpop.eup %1282  ;;  %vm657_vm9 = vcmp.eq.f32.partialorder %v605_v20, 0.0  ;;  %797 = vadd.xlane.f32.xlu0 %v796_v49  ;;  %v781_v11 = vmul.f32 %v1281_v45, %v749_v59 }
 0x21e   :  { %vm641_vm10 = vcmp.eq.f32.partialorder %v557_v6, 0.0  ;;  %v689_v53 = vsel %vm657_vm9, 1.0, %v605_v20  ;;  %v780_v14 = vmul.f32 %v1283_v21, %v748_v15  ;;  %v752_v21 = vmul.f32 %v1667_v31, %v1667_v31 }
 0x21f   :  { %v673_v57 = vsel %vm641_vm10, 1.0, %v557_v6  ;;  %1292 = vrcp.f32 %v689_v53  ;;  %v847_v24 = vsel %vm539_vm0, %v781_v11, 0.0 }
 0x220   :  { %1294 = vrcp.f32 %v673_v57  ;;  %v602_v60 = vpop.xlane.xlu1 %601  ;;  %848 = vadd.xlane.f32.xlu1 %v847_v24  ;;  %v844_v4 = vsel %vm539_vm0, %v780_v14, 0.0  ;;  %v736_v14 = vmul.f32 %v1663_v30, %v1663_v30 }
 0x221   :  { %v554_v3 = vpop.xlane.xlu0 %553  ;;  %v1285_v25 = vpop.eup %1284  ;;  %vm656_vm11 = vcmp.eq.f32.partialorder %v602_v60, 0.0  ;;  %845 = vadd.xlane.f32.xlu0 %v844_v4 }
 0x222   :  { %vm640_vm12 = vcmp.eq.f32.partialorder %v554_v3, 0.0  ;;  %v1287_v28 = vpop.eup %1286  ;;  %v688_v23 = vsel %vm656_vm11, 1.0, %v602_v60  ;;  %v783_v8 = vmul.f32 %v1285_v25, %v751_v61  ;;  %v755_v25 = vmul.f32 %v1677_v35, %v1677_v35 }
 0x223   :  { %v672_v29 = vsel %vm640_vm12, 1.0, %v554_v3  ;;  %1296 = vrcp.f32 %v688_v23  ;;  %v767_v32 = vmul.f32 %v1287_v28, %v735_v19 }
 0x224   :  { %1298 = vrcp.f32 %v672_v29  ;;  %v611_v9 = vpop.xlane.xlu1 %610  ;;  %v853_v39 = vsel %vm539_vm0, %v783_v8, 0.0  ;;  %v739_v29 = vmul.f32 %v1675_v34, %v1675_v34 }
 0x225   :  { %v563_v33 = vpop.xlane.xlu0 %562  ;;  %v1289_v36 = vpop.eup %1288  ;;  %vm659_vm13 = vcmp.eq.f32.partialorder %v611_v9, 0.0  ;;  %854 = vadd.xlane.f32.xlu1 %v853_v39  ;;  %v805_v12 = vsel %vm539_vm0, %v767_v32, 0.0  ;;  %v754_v39 = vmul.f32 %v1683_v42, %v1683_v42 }
 0x226   :  { %vm643_vm14 = vcmp.eq.f32.partialorder %v563_v33, 0.0  ;;  %v1291_v37 = vpop.eup %1290  ;;  %v691_v47 = vsel %vm659_vm13, 1.0, %v611_v9  ;;  %806 = vadd.xlane.f32.xlu0 %v805_v12  ;;  %v782_v51 = vmul.f32 %v1289_v36, %v750_v18 }
 0x227   :  { %v675_v40 = vsel %vm643_vm14, 1.0, %v563_v33  ;;  %1300 = vrcp.f32 %v691_v47  ;;  %v766_v22 = vmul.f32 %v1291_v37, %v734_v2  ;;  %v738_v37 = vmul.f32 %v1679_v38, %v1679_v38 }
 0x228   :  { %1302 = vrcp.f32 %v675_v40  ;;  %v608_v17 = vpop.xlane.xlu1 %607  ;;  %v850_v5 = vsel %vm539_vm0, %v782_v51, 0.0 }
 0x229   :  { %v560_v44 = vpop.xlane.xlu0 %559  ;;  %v1293_v59 = vpop.eup %1292  ;;  %vm658_vm15 = vcmp.eq.f32.partialorder %v608_v17, 0.0  ;;  %851 = vadd.xlane.f32.xlu1 %v850_v5  ;;  %v802_v45 = vsel %vm539_vm0, %v766_v22, 0.0 }
 0x22a   :  { %vm642_vm1 = vcmp.eq.f32.partialorder %v560_v44, 0.0  ;;  %v1295_v15 = vpop.eup %1294  ;;  %v690_v20 = vsel %vm658_vm15, 1.0, %v608_v17  ;;  %803 = vadd.xlane.f32.xlu0 %v802_v45  ;;  %v785_v49 = vmul.f32 %v1293_v59, %v753_v41  ;;  %v757_v17 = vmul.f32 %v1693_v13, %v1693_v13 }
 0x22b   :  { %v674_v6 = vsel %vm642_vm1, 1.0, %v560_v44  ;;  %1304 = vrcp.f32 %v690_v20  ;;  %v769_v27 = vmul.f32 %v1295_v15, %v737_v56  ;;  %v741_v56 = vmul.f32 %v1691_v43, %v1691_v43 }
 0x22c   :  { %1306 = vrcp.f32 %v674_v6  ;;  %v617_v11 = vpop.xlane.xlu1 %616  ;;  %v859_v26 = vsel %vm539_vm0, %v785_v49, 0.0 }
 0x22d   :  { %v569_v53 = vpop.xlane.xlu0 %568  ;;  %v1297_v57 = vpop.eup %1296  ;;  %vm661_vm2 = vcmp.eq.f32.partialorder %v617_v11, 0.0  ;;  %860 = vadd.xlane.f32.xlu1 %v859_v26  ;;  %v811_v24 = vsel %vm539_vm0, %v769_v27, 0.0  ;;  %v756_v27 = vmul.f32 %v1699_v50, %v1699_v50  ;;  %v740_v26 = vmul.f32 %v1695_v46, %v1695_v46 }
 0x22e   :  { %vm645_vm3 = vcmp.eq.f32.partialorder %v569_v53, 0.0  ;;  %v1299_v61 = vpop.eup %1298  ;;  %v693_v60 = vsel %vm661_vm2, 1.0, %v617_v11  ;;  %812 = vadd.xlane.f32.xlu0 %v811_v24  ;;  %v784_v4 = vmul.f32 %v1297_v57, %v752_v21 }
 0x22f   :  { %v677_v3 = vsel %vm645_vm3, 1.0, %v569_v53  ;;  %1308 = vrcp.f32 %v693_v60  ;;  %v768_v31 = vmul.f32 %v1299_v61, %v736_v14  ;;  %vm942_vm3 = vcmask 195712  }
 0x230   :  { %1310 = vrcp.f32 %v677_v3  ;;  %v614_v19 = vpop.xlane.xlu1 %613  ;;  %v856_v30 = vsel %vm539_vm0, %v784_v4, 0.0  ;;  %v759_v3 = vmul.f32 %v1709_v16, %v1709_v16 }
 0x231   :  { %v566_v28 = vpop.xlane.xlu0 %565  ;;  %v1301_v23 = vpop.eup %1300  ;;  %vm660_vm4 = vcmp.eq.f32.partialorder %v614_v19, 0.0  ;;  %857 = vadd.xlane.f32.xlu1 %v856_v30  ;;  %v808_v8 = vsel %vm539_vm0, %v768_v31, 0.0 }
 0x232   :  { %vm644_vm5 = vcmp.eq.f32.partialorder %v566_v28, 0.0  ;;  %v1303_v32 = vpop.eup %1302  ;;  %v692_v18 = vsel %vm660_vm4, 1.0, %v614_v19  ;;  %809 = vadd.xlane.f32.xlu0 %v808_v8  ;;  %v787_v33 = vmul.f32 %v1301_v23, %v755_v25  ;;  %v743_v19 = vmul.f32 %v1707_v54, %v1707_v54 }
 0x233   :  { %v676_v9 = vsel %vm644_vm5, 1.0, %v566_v28  ;;  %1312 = vrcp.f32 %v692_v18  ;;  %v771_v35 = vmul.f32 %v1303_v32, %v739_v29  ;;  %v758_v32 = vmul.f32 %v1715_v58, %v1715_v58 }
 0x234   :  { %1314 = vrcp.f32 %v676_v9  ;;  %v623_v36 = vpop.xlane.xlu1 %622  ;;  %v865_v34 = vsel %vm539_vm0, %v787_v33, 0.0  ;;  %v742_v33 = vmul.f32 %v1711_v55, %v1711_v55  ;;  %vm949_vm4 = vcmask 261312  }
 0x235   :  { %v575_v2 = vpop.xlane.xlu0 %574  ;;  %v1305_v12 = vpop.eup %1304  ;;  %vm663_vm6 = vcmp.eq.f32.partialorder %v623_v36, 0.0  ;;  %866 = vadd.xlane.f32.xlu1 %v865_v34  ;;  %v817_v47 = vsel %vm539_vm0, %v771_v35, 0.0  ;;  %vm956_vm5 = vcmask 326912  }
 0x236   :  { %vm647_vm7 = vcmp.eq.f32.partialorder %v575_v2, 0.0  ;;  %v1307_v40 = vpop.eup %1306  ;;  %v695_v51 = vsel %vm663_vm6, 1.0, %v623_v36  ;;  %818 = vadd.xlane.f32.xlu0 %v817_v47  ;;  %v786_v41 = vmul.f32 %v1305_v12, %v754_v39  ;;  %vm963_vm6 = vcmask 392512  }
 0x237   :  { %v679_v22 = vsel %vm647_vm7, 1.0, %v575_v2  ;;  %1316 = vrcp.f32 %v695_v51  ;;  %v770_v42 = vmul.f32 %v1307_v40, %v738_v37  ;;  %v761_v37 = vmul.f32 %v1725_v63, %v1725_v63 }
 0x238   :  { %1318 = vrcp.f32 %v679_v22  ;;  %v620_v44 = vpop.xlane.xlu1 %619  ;;  %v862_v38 = vsel %vm539_vm0, %v786_v41, 0.0  ;;  %v745_v51 = vmul.f32 %v1723_v62, %v1723_v62  ;;  %vm970_vm7 = vcmask 458112  }
 0x239   :  { %v572_v5 = vpop.xlane.xlu0 %571  ;;  %v1309_v59 = vpop.eup %1308  ;;  %vm662_vm8 = vcmp.eq.f32.partialorder %v620_v44, 0.0  ;;  %863 = vadd.xlane.f32.xlu1 %v862_v38  ;;  %v814_v45 = vsel %vm539_vm0, %v770_v42, 0.0  ;;  %v760_v38 = vmul.f32 %v1731_v48, %v1731_v48 }
 0x23a   :  { %vm646_vm9 = vcmp.eq.f32.partialorder %v572_v5, 0.0  ;;  %v1311_v15 = vpop.eup %1310  ;;  %v694_v20 = vsel %vm662_vm8, 1.0, %v620_v44  ;;  %815 = vadd.xlane.f32.xlu0 %v814_v45  ;;  %v789_v49 = vmul.f32 %v1309_v59, %v757_v17  ;;  %vm977_vm8 = vcmask 523712  }
 0x23b   :  { %v678_v6 = vsel %vm646_vm9, 1.0, %v572_v5  ;;  %1320 = vrcp.f32 %v694_v20  ;;  %v773_v13 = vmul.f32 %v1311_v15, %v741_v56  ;;  %v744_v56 = vmul.f32 %v1727_v0, %v1727_v0 }
 0x23c   :  { %1322 = vrcp.f32 %v678_v6  ;;  %v629_v21 = vpop.xlane.xlu1 %628  ;;  %v871_v43 = vsel %vm539_vm0, %v789_v49, 0.0  ;;  %v746_v49 = vmul.f32 %v1743_v10, %v1743_v10  ;;  %v763_v10 = vmul.f32 %v1741_v7, %v1741_v7 }
 0x23d   :  { %v581_v11 = vpop.xlane.xlu0 %580  ;;  %v1313_v53 = vpop.eup %1312  ;;  %vm665_vm10 = vcmp.eq.f32.partialorder %v629_v21, 0.0  ;;  %872 = vadd.xlane.f32.xlu1 %v871_v43  ;;  %v823_v57 = vsel %vm539_vm0, %v773_v13, 0.0  ;;  %vm984_vm9 = vcmask 589312  }
 0x23e   :  { %vm649_vm11 = vcmp.eq.f32.partialorder %v581_v11, 0.0  ;;  %v1315_v14 = vpop.eup %1314  ;;  %v697_v24 = vsel %vm665_vm10, 1.0, %v629_v21  ;;  %824 = vadd.xlane.f32.xlu0 %v823_v57  ;;  %v788_v60 = vmul.f32 %v1313_v53, %v756_v27  ;;  %v762_v27 = vmul.f32 %v1745_v52, %v1745_v52 }
 0x23f   :  { %v681_v61 = vsel %vm649_vm11, 1.0, %v581_v11  ;;  %1324 = vrcp.f32 %v697_v24  ;;  %v772_v50 = vmul.f32 %v1315_v14, %v740_v26  ;;  %v747_v53 = vmul.f32 %v1739_v1, %v1739_v1 }
 0x240   :  { %1326 = vrcp.f32 %v681_v61  ;;  %v626_v4 = vpop.xlane.xlu1 %625  ;;  %v868_v46 = vsel %vm539_vm0, %v788_v60, 0.0  ;;  %vm991_vm10 = vcmask 654912   ;;  %vm998_vm11 = vcmask 720512  }
 0x241   :  { %v578_v31 = vpop.xlane.xlu0 %577  ;;  %v1317_v25 = vpop.eup %1316  ;;  %vm664_vm12 = vcmp.eq.f32.partialorder %v626_v4, 0.0  ;;  %869 = vadd.xlane.f32.xlu1 %v868_v46  ;;  %v820_v28 = vsel %vm539_vm0, %v772_v50, 0.0 }
 0x242   :  { %vm648_vm13 = vcmp.eq.f32.partialorder %v578_v31, 0.0  ;;  %v1319_v30 = vpop.eup %1318  ;;  %v696_v23 = vsel %vm664_vm12, 1.0, %v626_v4  ;;  %821 = vadd.xlane.f32.xlu0 %v820_v28  ;;  %v791_v8 = vmul.f32 %v1317_v25, %v759_v3  ;;  %vm1005_vm12 = vcmask 786112  }
 0x243   :  { %v680_v29 = vsel %vm648_vm13, 1.0, %v578_v31  ;;  %1328 = vrcp.f32 %v696_v23  ;;  %v775_v16 = vmul.f32 %v1319_v30, %v743_v19  ;;  %v924_v23 = vlaneseq }
 0x244   :  { %1330 = vrcp.f32 %v680_v29  ;;  %v877_v9 = vsel %vm539_vm0, %v791_v8, 0.0  ;;  %vm1012_vm13 = vcmask 851712  }
 0x245   :  { %v584_v18 = vpop.xlane.xlu0 %583  ;;  %v1321_v54 = vpop.eup %1320  ;;  %878 = vadd.xlane.f32.xlu1 %v877_v9  ;;  %v829_v39 = vsel %vm539_vm0, %v775_v16, 0.0  ;;  %v1855_v16 = vand.u32 127, %v924_v23  ;;  %v1861_v9 = vshrl.u32 %v924_v23, 7 }
 0x246   :  { %vm650_vm14 = vcmp.eq.f32.partialorder %v584_v18, 0.0  ;;  %v632_v35 = vpop.xlane.xlu1 %631  ;;  %v1323_v36 = vpop.eup %1322  ;;  %830 = vadd.xlane.f32.xlu0 %v829_v39  ;;  %v790_v34 = vmul.f32 %v1321_v54, %v758_v32 }
 0x247   :  { %v682_v2 = vsel %vm650_vm14, 1.0, %v584_v18  ;;  %vm666_vm15 = vcmp.eq.f32.partialorder %v632_v35, 0.0  ;;  %v774_v12 = vmul.f32 %v1323_v36, %v742_v33  ;;  %v930_v54 = vadd.s32 4294967288, %v1855_v16 }
 0x248   :  { %1332 = vrcp.f32 %v682_v2  ;;  %v698_v58 = vsel %vm666_vm15, 1.0, %v632_v35  ;;  %v874_v55 = vsel %vm539_vm0, %v790_v34, 0.0  ;;  %v937_v33 = vadd.s32 4294967280, %v1855_v16 }
 0x249   :  { %1334 = vrcp.f32 %v698_v58  ;;  %v587_v47 = vpop.xlane.xlu0 %586  ;;  %v1325_v40 = vpop.eup %1324  ;;  %875 = vadd.xlane.f32.xlu1 %v874_v55  ;;  %v826_v41 = vsel %vm539_vm0, %v774_v12, 0.0  ;;  %v933_v36 = vsub.s32 %v930_v54, %v1861_v9  ;;  %v928_v2 = vsub.s32 %v1855_v16, %v1861_v9 }
 0x24a   :  { %vm651_vm1 = vcmp.eq.f32.partialorder %v587_v47, 0.0  ;;  %v635_v22 = vpop.xlane.xlu1 %634  ;;  %v1327_v42 = vpop.eup %1326  ;;  %827 = vadd.xlane.f32.xlu0 %v826_v41  ;;  %v793_v44 = vmul.f32 %v1325_v40, %v761_v37  ;;  %v940_v34 = vsub.s32 %v937_v33, %v1861_v9  ;;  %v951_v58 = vadd.s32 4294967264, %v1855_v16 }
 0x24b   :  { %v683_v17 = vsel %vm651_vm1, 1.0, %v587_v47  ;;  %vm667_vm2 = vcmp.eq.f32.partialorder %v635_v22, 0.0  ;;  %v777_v5 = vmul.f32 %v1327_v42, %v745_v51  ;;  %v944_v12 = vadd.s32 4294967272, %v1855_v16 }
 0x24c   :  { %1336 = vrcp.f32 %v683_v17  ;;  %v699_v63 = vsel %vm667_vm2, 1.0, %v635_v22  ;;  %v883_v59 = vsel %vm539_vm0, %v793_v44, 0.0  ;;  %v965_v47 = vadd.s32 4294967248, %v1855_v16 }
 0x24d   :  { %1338 = vrcp.f32 %v699_v63  ;;  %v1329_v62 = vpop.eup %1328  ;;  %884 = vadd.xlane.f32.xlu1 %v883_v59  ;;  %v835_v45 = vsel %vm539_vm0, %v777_v5, 0.0  ;;  %v954_v44 = vsub.s32 %v951_v58, %v1861_v9  ;;  %v947_v63 = vsub.s32 %v944_v12, %v1861_v9 }
 0x24e   :  { %v1331_v15 = vpop.eup %1330  ;;  %836 = vadd.xlane.f32.xlu0 %v835_v45  ;;  %v792_v20 = vmul.f32 %v1329_v62, %v760_v38  ;;  %v958_v5 = vadd.s32 4294967256, %v1855_v16  ;;  %v972_v59 = vadd.s32 4294967240, %v1855_v16  ;;  %v1007_v23 = vadd.s32 4294967200, %v1855_v16 }
 0x24f   :  { %v776_v6 = vmul.f32 %v1331_v15, %v744_v56  ;;  %v968_v15 = vsub.s32 %v965_v47, %v1861_v9  ;;  %v1021_v47 = vadd.s32 4294967184, %v1855_v16  ;;  %vm1019_vm14 = vcmask 917312  }
 0x250   :  { %v880_v13 = vsel %vm539_vm0, %v792_v20, 0.0  ;;  %v979_v20 = vadd.s32 4294967232, %v1855_v16  ;;  %v1010_v12 = vsub.s32 %v1007_v23, %v1861_v9  ;;  %vm1026_vm15 = vcmask 982912  }
 0x251   :  { %881 = vadd.xlane.f32.xlu1 %v880_v13  ;;  %v832_v21 = vsel %vm539_vm0, %v776_v6, 0.0  ;;  %vm1033_vm1 = vcmask 1048512   ;;  %vm1114_vm2 = vcmask 1041409  }
 0x252   :  { %v1333_v48 = vpop.eup %1332  ;;  %833 = vadd.xlane.f32.xlu0 %v832_v21 }
 0x253   :  { %v1335_v0 = vpop.eup %1334  ;;  %v778_v11 = vmul.f32 %v1333_v48, %v746_v49 }
 0x254   :  { %v794_v43 = vmul.f32 %v1335_v0, %v762_v27  ;;  %v961_v0 = vsub.s32 %v958_v5, %v1861_v9 }
 0x255   :  { %v838_v26 = vsel %vm539_vm0, %v778_v11, 0.0 }
 0x256   :  { %v1337_v57 = vpop.eup %1336  ;;  %v886_v14 = vsel %vm539_vm0, %v794_v43, 0.0  ;;  %839 = vadd.xlane.f32.xlu0 %v838_v26  ;;  %v975_v43 = vsub.s32 %v972_v59, %v1861_v9  ;;  %v1028_v59 = vadd.s32 4294967176, %v1855_v16 }
 0x257   :  { %v1339_v24 = vpop.eup %1338  ;;  %887 = vadd.xlane.f32.xlu1 %v886_v14  ;;  %v779_v52 = vmul.f32 %v1337_v57, %v747_v53  ;;  %v993_v14 = vadd.s32 4294967216, %v1855_v16 }
 0x258   :  { %v795_v61 = vmul.f32 %v1339_v24, %v763_v10  ;;  %v982_v10 = vsub.s32 %v979_v20, %v1861_v9 }
 0x259   :  { %v841_v60 = vsel %vm539_vm0, %v779_v52, 0.0 }
 0x25a   :  { %v889_v50 = vsel %vm539_vm0, %v795_v61, 0.0  ;;  %842 = vadd.xlane.f32.xlu0 %v841_v60  ;;  %vm935_vm0 = vcmask 130112  }
 0x25b   :  { %890 = vadd.xlane.f32.xlu1 %v889_v50 }
 0x2a9   :  { %v801_v1 = vpop.xlane.xlu1 %800 }
 0x2aa   :  { %v798_v3 = vpop.xlane.xlu0 %797  ;;  %v934_v40 = vrot.slane %v801_v1, %v933_v36 }
 0x2ab   :  { %v929_v51 = vrot.slane %v798_v3, %v928_v2  ;;  %v986_v3 = vadd.s32 4294967224, %v1855_v16 }
 0x2ad   :  { %v849_v4 = vpop.xlane.xlu1 %848  ;;  %v936_v56 = vsel %vm935_vm0, %v934_v40, %v929_v51 }
 0x2ae   :  { %v846_v31 = vpop.xlane.xlu0 %845  ;;  %v1042_v22 = vrot.slane %v849_v4, %v933_v36 }
 0x2af   :  { %v1038_v41 = vrot.slane %v846_v31, %v928_v2  ;;  %v1000_v31 = vadd.s32 4294967208, %v1855_v16 }
 0x2b1   :  { %v1043_v45 = vsel %vm935_vm0, %v1042_v22, %v1038_v41  ;;  %v1003_v36 = vsub.s32 %v1000_v31, %v1861_v9 }
 0x2b2   :  { %v855_v46 = vpop.xlane.xlu1 %854 }
 0x2b3   :  { %v807_v25 = vpop.xlane.xlu0 %806  ;;  %v1052_v27 = vrot.slane %v855_v46, %v947_v63 }
 0x2b4   :  { %v948_v21 = vrot.slane %v807_v25, %v947_v63 }
 0x2b6   :  { %v852_v7 = vpop.xlane.xlu1 %851 }
 0x2b7   :  { %v804_v19 = vpop.xlane.xlu0 %803  ;;  %v1047_v42 = vrot.slane %v852_v7, %v940_v34 }
 0x2b8   :  { %v941_v17 = vrot.slane %v804_v19, %v940_v34  ;;  %v996_v19 = vsub.s32 %v993_v14, %v1861_v9 }
 0x2b9   :  { %v1048_v6 = vsel %vm942_vm3, %v1047_v42, %v1043_v45  ;;  %v1014_v42 = vadd.s32 4294967192, %v1855_v16  ;;  %v1031_v16 = vsub.s32 %v1028_v59, %v1861_v9 }
 0x2ba   :  { %v1851_v28 = vpop.xlane.xlu1 %860  ;;  %v943_v49 = vsel %vm942_vm3, %v941_v17, %v936_v56  ;;  %v1053_v26 = vsel %vm949_vm4, %v1052_v27, %v1048_v6 }
 0x2bb   :  { %v1853_v30 = vpop.xlane.xlu0 %812  ;;  %v950_v57 = vsel %vm949_vm4, %v948_v21, %v943_v49  ;;  %v1062_v50 = vrot.slane %v1851_v28, %v961_v0  ;;  %v1017_v20 = vsub.s32 %v1014_v42, %v1861_v9 }
 0x2bc   :  { %v962_v1 = vrot.slane %v1853_v30, %v961_v0 }
 0x2be   :  { %v858_v29 = vpop.xlane.xlu1 %857 }
 0x2bf   :  { %v810_v8 = vpop.xlane.xlu0 %809  ;;  %v1057_v13 = vrot.slane %v858_v29, %v954_v44 }
 0x2c0   :  { %v955_v48 = vrot.slane %v810_v8, %v954_v44 }
 0x2c1   :  { %v1058_v24 = vsel %vm956_vm5, %v1057_v13, %v1053_v26 }
 0x2c2   :  { %v1857_v32 = vpop.xlane.xlu1 %866  ;;  %v957_v52 = vsel %vm956_vm5, %v955_v48, %v950_v57  ;;  %v1063_v25 = vsel %vm963_vm6, %v1062_v50, %v1058_v24 }
 0x2c3   :  { %v1859_v18 = vpop.xlane.xlu0 %818  ;;  %v964_v7 = vsel %vm963_vm6, %v962_v1, %v957_v52  ;;  %v1072_v54 = vrot.slane %v1857_v32, %v975_v43 }
 0x2c4   :  { %v976_v33 = vrot.slane %v1859_v18, %v975_v43 }
 0x2c6   :  { %v1865_v35 = vpop.xlane.xlu1 %863 }
 0x2c7   :  { %v1867_v39 = vpop.xlane.xlu0 %815  ;;  %v1067_v61 = vrot.slane %v1865_v35, %v968_v15  ;;  %v989_v35 = vsub.s32 %v986_v3, %v1861_v9 }
 0x2c8   :  { %v969_v60 = vrot.slane %v1867_v39, %v968_v15 }
 0x2c9   :  { %v1068_v29 = vsel %vm970_vm7, %v1067_v61, %v1063_v25 }
 0x2ca   :  { %v1875_v37 = vpop.xlane.xlu1 %872  ;;  %v971_v28 = vsel %vm970_vm7, %v969_v60, %v964_v7  ;;  %v1073_v34 = vsel %vm977_vm8, %v1072_v54, %v1068_v29 }
 0x2cb   :  { %v1878_v55 = vpop.xlane.xlu0 %824  ;;  %v978_v58 = vsel %vm977_vm8, %v976_v33, %v971_v28  ;;  %v1082_v22 = vrot.slane %v1875_v37, %v989_v35 }
 0x2cc   :  { %v990_v41 = vrot.slane %v1878_v55, %v989_v35 }
 0x2ce   :  { %v870_v38 = vpop.xlane.xlu1 %869 }
 0x2cf   :  { %v822_v62 = vpop.xlane.xlu0 %821  ;;  %v1077_v8 = vrot.slane %v870_v38, %v982_v10  ;;  %v1024_v38 = vsub.s32 %v1021_v47, %v1861_v9 }
 0x2d0   :  { %v983_v30 = vrot.slane %v822_v62, %v982_v10 }
 0x2d1   :  { %v1078_v40 = vsel %vm984_vm9, %v1077_v8, %v1073_v34 }
 0x2d2   :  { %v1887_v11 = vpop.xlane.xlu1 %878  ;;  %v985_v32 = vsel %vm984_vm9, %v983_v30, %v978_v58  ;;  %v1083_v63 = vsel %vm991_vm10, %v1082_v22, %v1078_v40 }
 0x2d3   :  { %v1890_v53 = vpop.xlane.xlu0 %830  ;;  %v992_v5 = vsel %vm991_vm10, %v990_v41, %v985_v32  ;;  %v1092_v55 = vrot.slane %v1887_v11, %v1003_v36 }
 0x2d4   :  { %v1004_v15 = vrot.slane %v1890_v53, %v1003_v36 }
 0x2d6   :  { %v876_v4 = vpop.xlane.xlu1 %875 }
 0x2d7   :  { %v828_v46 = vpop.xlane.xlu0 %827  ;;  %v1087_v51 = vrot.slane %v876_v4, %v996_v19 }
 0x2d8   :  { %v997_v18 = vrot.slane %v828_v46, %v996_v19 }
 0x2d9   :  { %v1088_v62 = vsel %vm998_vm11, %v1087_v51, %v1083_v63 }
 0x2da   :  { %v885_v39 = vpop.xlane.xlu1 %884  ;;  %v999_v56 = vsel %vm998_vm11, %v997_v18, %v992_v5  ;;  %v1093_v13 = vsel %vm1005_vm12, %v1092_v55, %v1088_v62 }
 0x2db   :  { %v837_v2 = vpop.xlane.xlu0 %836  ;;  %v1006_v48 = vsel %vm1005_vm12, %v1004_v15, %v999_v56  ;;  %v1102_v26 = vrot.slane %v885_v39, %v1017_v20 }
 0x2dc   :  { %v1018_v11 = vrot.slane %v837_v2, %v1017_v20 }
 0x2de   :  { %v882_v17 = vpop.xlane.xlu1 %881 }
 0x2df   :  { %v834_v44 = vpop.xlane.xlu0 %833  ;;  %v1097_v45 = vrot.slane %v882_v17, %v1010_v12 }
 0x2e0   :  { %v1011_v37 = vrot.slane %v834_v44, %v1010_v12 }
 0x2e1   :  { %v1098_v27 = vsel %vm1012_vm13, %v1097_v45, %v1093_v13 }
 0x2e2   :  { %v1013_v21 = vsel %vm1012_vm13, %v1011_v37, %v1006_v48  ;;  %v1103_v14 = vsel %vm1019_vm14, %v1102_v26, %v1098_v27 }
 0x2e3   :  { %v840_v6 = vpop.xlane.xlu0 %839  ;;  %v1020_v10 = vsel %vm1019_vm14, %v1018_v11, %v1013_v21 }
 0x2e4   :  { %v888_v49 = vpop.xlane.xlu1 %887  ;;  %v1025_v0 = vrot.slane %v840_v6, %v1024_v38 }
 0x2e5   :  { %v1107_v43 = vrot.slane %v888_v49, %v1024_v38 }
 0x2e6   :  { %v1027_v61 = vsel %vm1026_vm15, %v1025_v0, %v1020_v10 }
 0x2e7   :  { %v843_v53 = vpop.xlane.xlu0 %842  ;;  %v1108_v60 = vsel %vm1026_vm15, %v1107_v43, %v1103_v14 }
 0x2e8   :  { %v891_v57 = vpop.xlane.xlu1 %890  ;;  %v1032_v24 = vrot.slane %v843_v53, %v1031_v16 }
 0x2e9   :  { %v1112_v52 = vrot.slane %v891_v57, %v1031_v16 }
 0x2ea   :  { %v1034_v50 = vsel %vm1033_vm1, %v1032_v24, %v1027_v61 }
 0x2eb   :  { %v1113_v1 = vsel %vm1033_vm1, %v1112_v52, %v1108_v60 }
 0x2ec   :  { %v1115_v9 = vsel %vm1114_vm2, %v1113_v1, %v1034_v50 }
 0x2ed   :  { %1117 = vst [vmem:[%s1932_s2] sm:$0x3] %v1115_v9 }

</bundles_post_ra>
